<compile_context>
chip_gen: v5e
topology: v5e:2x2
jax: 0.10.0
libtpu: 0.0.40
codegen_flags: <defaults>
</compile_context>

<pallas_src>
import functools

import numpy as np
import jax
import jax.numpy as jnp
from jax import lax
from jax.experimental import pallas as pl
from jax.experimental.pallas import tpu as pltpu

EPS = 1e-5
LANES = 128
TARGET_ROWS = 1024  # pass-1 sublane-tile target (review: 512-2048 sweet spot)


def _round_up(x, m):
    return ((x + m - 1) // m) * m


def _vmem_limit_bytes():
    # Per-generation VMEM budget instead of a hard-coded 32 MiB:
    # ~96 MiB on v5e/v6e (128 MiB physical), ~48 MiB on v7x (64 MiB physical).
    try:
        cap = pltpu.get_tpu_info().vmem_capacity_bytes
    except Exception:
        cap = 64 * 1024 * 1024
    return int(min(cap * 3 // 4, 100 * 1024 * 1024))


# --------------------------------------------------------------------------- #
# Pass 1: conv (kh matmuls, K = kw*Cin) + per-image per-channel sum / sum^2    #
# --------------------------------------------------------------------------- #
def _conv_stats_kernel(x_ref, w_ref, mask_ref, y_ref, sum_ref, sq_ref, acc_ref,
                       *, kh, wp, rows):
    # x_ref   : (1, 1, Lw, kw*Cin)  halo window of this row tile (kw pre-folded)
    # w_ref   : (kh, kw*Cin, Cpad)  weights, VMEM-resident across the grid
    # mask_ref: (1, rows, 1)        1.0 for valid output positions of this tile
    # y_ref   : (1, rows, Cpad)     conv output tile (row-major over (th, Wp))
    # sum_ref : (1, 8, Cpad)        per-image running sum   (accumulator output)
    # sq_ref  : (1, 8, Cpad)        per-image running sum^2 (accumulator output)
    # acc_ref : (rows, Cpad) f32    VMEM scratch accumulator
    r = pl.program_id(1)

    @pl.when(r == 0)
    def _init():
        sum_ref[...] = jnp.zeros_like(sum_ref)
        sq_ref[...] = jnp.zeros_like(sq_ref)

    # stride == 1: tap for kernel row i of the whole row tile is a contiguous
    # 2-D slice (rows, kw*Cin) -> kh matmuls with the kw taps folded into K.
    for i in range(kh):
        tap = x_ref[0, 0, pl.ds(i * wp, rows), :]            # (rows, kw*Cin)
        part = jnp.dot(tap, w_ref[i], preferred_element_type=jnp.float32)
        if i == 0:
            acc_ref[...] = part
        else:
            acc_ref[...] += part

    acc = acc_ref[...]                                       # f32
    y_ref[0, :, :] = acc.astype(y_ref.dtype)

    # BatchNorm partial statistics from the f32 accumulator; the mask drops the
    # width wrap/pad columns and the tail rows past Ho of the last tile.
    ym = acc * mask_ref[0]
    sum_ref[...] += jnp.sum(ym, axis=0, keepdims=True)[None]
    sq_ref[...] += jnp.sum(ym * ym, axis=0, keepdims=True)[None]


# --------------------------------------------------------------------------- #
# Pass 2: relu(y * scale + shift)                                              #
# --------------------------------------------------------------------------- #
def _bn_relu_kernel(y_ref, scale_ref, shift_ref, o_ref):
    y = y_ref[...].astype(jnp.float32)
    o_ref[...] = jnp.maximum(y * scale_ref[...] + shift_ref[...],
                             0.0).astype(o_ref.dtype)


# --------------------------------------------------------------------------- #
# Wrapper                                                                      #
# --------------------------------------------------------------------------- #
def conv_bn_relu(x_nchw, weight_oihw, gamma, beta, stride=1, pad=1,
                 matmul_dtype=jnp.bfloat16):
    """Pallas ConvBnReLU forward (PyTorch NCHW in / NCHW out).

    x_nchw:      (N, Cin, H, W) f32
    weight_oihw: (Cout, Cin, kh, kw) f32   (nn.Conv2d weight, bias=False)
    gamma, beta: (Cout,) f32               (BatchNorm2d affine)
    matmul_dtype: MXU operand dtype (bf16 default; f32 for bit-parity tests).
    """
    N, Cin, H, W = x_nchw.shape
    Cout, Cin_w, kh, kw = weight_oihw.shape
    assert Cin_w == Cin
    if stride != 1:
        # TODO(synk): stride>1 needs strided tap slices (or a tiled im2col);
        # the module default stride=1 is what is implemented here.
        raise NotImplementedError("Pallas ConvBnReLU supports stride=1 only.")

    Hp, Wp = H + 2 * pad, W + 2 * pad
    Ho, Wo = Hp - kh + 1, Wp - kw + 1
    Cpad = _round_up(Cout, LANES)
    KC = kw * Cin
    mm_dtype = jnp.dtype(matmul_dtype)
    y_dtype = mm_dtype                     # y intermediate follows MXU dtype

    # Row tile: th a multiple of 16 (bf16 sublane packing), rows = th*Wp in the
    # ~512-2048 sublane range; tail rows handled by masking (cdiv grid).
    th = max(16, (TARGET_ROWS // Wp) // 16 * 16)
    th = min(th, _round_up(Ho, 16))
    n_rt = -(-Ho // th)                    # cdiv
    Ho_pad = n_rt * th
    rows = th * Wp
    Lw = (th + kh - 1) * Wp                # window rows per tile (with halo)
    Hp_ext = Ho_pad + kh                   # padded rows incl. bottom overrun

    # ---- wrapper-side layout plumbing (one XLA gather over the small input) --
    x_nhwc = jnp.transpose(x_nchw, (0, 2, 3, 1)).astype(mm_dtype)
    xp = jnp.pad(x_nhwc, ((0, 0), (pad, pad + (Hp_ext - Hp)), (pad, pad), (0, 0)))
    xflat = xp.reshape(N, Hp_ext * Wp, Cin)
    # window tiles with the kw taps folded into the minor dim:
    #   x_tiles[n, r, p, j*Cin + c] = xflat[n, r*th*Wp + p + j, c]
    idx = (np.arange(n_rt)[:, None, None] * (th * Wp)
           + np.arange(Lw)[None, :, None]
           + np.arange(kw)[None, None, :]).reshape(-1)
    x_tiles = jnp.take(xflat, jnp.asarray(np.asarray(idx, np.int32)),
                       axis=1).reshape(N, n_rt, Lw, KC)
    # TODO(synk): for tiny Cin a Wp*Cin lane-dense minor layout (+ in-VMEM
    # concat of the kw taps) would also remove the ~128/KC lane padding.

    # weights: (Cout, Cin, kh, kw) -> (kh, kw*Cin, Cpad), channel-padded.
    w = jnp.transpose(weight_oihw, (2, 3, 1, 0)).reshape(kh, KC, Cout)
    w = jnp.pad(w, ((0, 0), (0, 0), (0, Cpad - Cout))).astype(mm_dtype)

    # Validity mask per row tile: drops wrap/right-pad columns and tail rows.
    p = np.arange(rows)
    col_ok = (p % Wp) < Wo
    row_ok = (np.arange(n_rt)[:, None] * th + (p // Wp)[None, :]) < Ho
    mask = jnp.asarray((col_ok[None, :] & row_ok).astype(np.float32)
                       ).reshape(n_rt, rows, 1)

    vmem_limit = _vmem_limit_bytes()

    flops1 = 2 * N * n_rt * rows * kh * KC * Cpad
    bytes1 = (x_tiles.size * x_tiles.dtype.itemsize
              + w.size * w.dtype.itemsize
              + N * n_rt * rows * Cpad * jnp.dtype(y_dtype).itemsize)

    # ---- Pass 1: conv + per-image BN partial stats ---------------------------
    y, psum, psq = pl.pallas_call(
        functools.partial(_conv_stats_kernel, kh=kh, wp=Wp, rows=rows),
        grid=(N, n_rt),
        in_specs=[
            pl.BlockSpec((1, 1, Lw, KC), lambda n, r: (n, r, 0, 0)),   # window tile
            pl.BlockSpec((kh, KC, Cpad), lambda n, r: (0, 0, 0)),      # resident W
            pl.BlockSpec((1, rows, 1), lambda n, r: (r, 0, 0)),        # tile mask
        ],
        out_specs=[
            pl.BlockSpec((1, rows, Cpad), lambda n, r: (n, r, 0)),     # conv tile
            pl.BlockSpec((1, 8, Cpad), lambda n, r: (n, 0, 0)),        # per-image sum
            pl.BlockSpec((1, 8, Cpad), lambda n, r: (n, 0, 0)),        # per-image sum^2
        ],
        out_shape=[
            jax.ShapeDtypeStruct((N, Ho_pad * Wp, Cpad), y_dtype),
            jax.ShapeDtypeStruct((N, 8, Cpad), jnp.float32),
            jax.ShapeDtypeStruct((N, 8, Cpad), jnp.float32),
        ],
        scratch_shapes=[pltpu.VMEM((rows, Cpad), jnp.float32)],
        compiler_params=pltpu.CompilerParams(
            dimension_semantics=("parallel", "arbitrary"),  # batch parallel (v7x 2 TC)
            vmem_limit_bytes=vmem_limit),
        cost_estimate=pl.CostEstimate(flops=flops1, transcendentals=0,
                                      bytes_accessed=bytes1),
    )(x_tiles, w, mask)

    # ---- BN finalize (tiny per-channel math, once, in XLA) -------------------
    cnt = jnp.float32(N * Ho * Wo)
    tot_s = jnp.sum(psum[:, 0, :], axis=0)                    # (Cpad,)
    tot_q = jnp.sum(psq[:, 0, :], axis=0)
    mean = tot_s / cnt
    # Single-pass E[y^2]-E[y]^2 (cancellation-prone if |mean| >> std; accepted
    # trade-off, clamped at 0).
    var = jnp.maximum(tot_q / cnt - mean * mean, 0.0)
    inv_std = lax.rsqrt(var + EPS)
    g = jnp.pad(gamma.astype(jnp.float32), (0, Cpad - Cout))
    b = jnp.pad(beta.astype(jnp.float32), (0, Cpad - Cout))
    scale = (g * inv_std).reshape(1, Cpad)
    shift = (b - mean * g * inv_std).reshape(1, Cpad)

    # ---- Pass 2: relu(y*scale + shift) on a flat lane-dense view -------------
    tot_rows = N * Ho_pad * Wp
    tiles_total = N * n_rt
    m = 1
    for cand in range(tiles_total, 0, -1):                    # biggest block <= 2048 rows
        if tiles_total % cand == 0 and cand * rows <= 2048:
            m = cand
            break
    R2 = m * rows

    out2 = pl.pallas_call(
        _bn_relu_kernel,
        grid=(tot_rows // R2,),
        in_specs=[
            pl.BlockSpec((R2, Cpad), lambda i: (i, 0)),
            pl.BlockSpec((1, Cpad), lambda i: (0, 0)),
            pl.BlockSpec((1, Cpad), lambda i: (0, 0)),
        ],
        out_specs=pl.BlockSpec((R2, Cpad), lambda i: (i, 0)),
        out_shape=jax.ShapeDtypeStruct((tot_rows, Cpad), jnp.float32),
        compiler_params=pltpu.CompilerParams(
            dimension_semantics=("parallel",),
            vmem_limit_bytes=vmem_limit),
        cost_estimate=pl.CostEstimate(
            flops=2 * tot_rows * Cpad, transcendentals=0,
            bytes_accessed=tot_rows * Cpad * (jnp.dtype(y_dtype).itemsize + 4)),
    )(y.reshape(tot_rows, Cpad), scale, shift)

    # Drop the width wrap/pad columns, tail rows and channel padding; -> NCHW.
    # TODO(synk): emit NHWC directly from pass 2 (and drop wrap columns there)
    # if the consumer accepts channels-last, saving this extra XLA pass.
    out = out2.reshape(N, Ho_pad, Wp, Cpad)[:, :Ho, :Wo, :Cout]
    return jnp.transpose(out, (0, 3, 1, 2))


# --------------------------------------------------------------------------- #
# Pure-JAX reference (PyTorch Conv2d + BatchNorm2d(train) + ReLU semantics)    #
# --------------------------------------------------------------------------- #
def _reference(x_nchw, weight_oihw, gamma, beta, stride=1, pad=1):
    y = lax.conv_general_dilated(
        x_nchw, weight_oihw,
        window_strides=(stride, stride),
        padding=((pad, pad), (pad, pad)),
        dimension_numbers=("NCHW", "OIHW", "NCHW"),
        precision=lax.Precision.HIGHEST,
    )
    mean = jnp.mean(y, axis=(0, 2, 3), keepdims=True)
    var = jnp.mean((y - mean) ** 2, axis=(0, 2, 3), keepdims=True)  # biased
    y_hat = (y - mean) * lax.rsqrt(var + EPS)
    out = y_hat * gamma.reshape(1, -1, 1, 1) + beta.reshape(1, -1, 1, 1)
    return jnp.maximum(out, 0.0)


if __name__ == "__main__":
    key = jax.random.PRNGKey(0)
    k_x, k_w = jax.random.split(key)

    N, Cin, H, W = 2, 4, 16, 16
    Cout, ksize, stride, pad = 8, 3, 1, 1

    x = jax.random.normal(k_x, (N, Cin, H, W), dtype=jnp.float32)
    fan_in = Cin * ksize * ksize
    weight = jax.random.normal(k_w, (Cout, Cin, ksize, ksize), dtype=jnp.float32)
    weight = weight * (1.0 / np.sqrt(fan_in))
    gamma = jnp.ones((Cout,), dtype=jnp.float32)   # BatchNorm2d default affine
    beta = jnp.zeros((Cout,), dtype=jnp.float32)

    ref = jax.block_until_ready(
        _reference(x, weight, gamma, beta, stride=stride, pad=pad))

    # Bit-parity path: f32 MXU operands, f32 y intermediate -> tight tolerance.
    fn_f32 = jax.jit(functools.partial(conv_bn_relu, stride=stride, pad=pad,
                                       matmul_dtype=jnp.float32))
    out_f32 = jax.block_until_ready(fn_f32(x, weight, gamma, beta))
    assert out_f32.shape == (N, Cout, H, W)
    np.testing.assert_allclose(np.asarray(out_f32), np.asarray(ref),
                               rtol=1e-4, atol=1e-4)

    # Default fast path: bf16 MXU operands + bf16 y intermediate -> loose
    # tolerance (bf16 rounding of conv operands and of the y intermediate).
    fn_bf16 = jax.jit(functools.partial(conv_bn_relu, stride=stride, pad=pad))
    out_bf16 = jax.block_until_ready(fn_bf16(x, weight, gamma, beta))
    assert out_bf16.shape == (N, Cout, H, W)
    np.testing.assert_allclose(np.asarray(out_bf16), np.asarray(ref),
                               rtol=1e-1, atol=1e-1)

    print("KERNEL_OK")
</pallas_src>

<mosaic_0001>
module attributes {stable_mosaic.version = 11 : i64} {
  func.func @_conv_stats_kernel(%arg0: i32, %arg1: i32, %arg2: memref<1x1x324x12xf32, #tpu.memory_space<vmem>>, %arg3: memref<3x12x128xf32, #tpu.memory_space<vmem>>, %arg4: memref<1x288x1xf32, #tpu.memory_space<vmem>>, %arg5: memref<1x288x128xf32, #tpu.memory_space<vmem>>, %arg6: memref<1x8x128xf32, #tpu.memory_space<vmem>>, %arg7: memref<1x8x128xf32, #tpu.memory_space<vmem>>, %arg8: memref<288x128xf32, #tpu.memory_space<vmem>>) attributes {dimension_semantics = [#tpu.dimension_semantics<parallel>, #tpu.dimension_semantics<arbitrary>], iteration_bounds = array<i64: 2, 1>, scalar_prefetch = 0 : i64, scratch_operands = 1 : i64, tpu.core_type = #tpu.core_type<tc>, window_params = [{transform_indices = @transform_0, window_bounds = array<i64: 1, 1, 324, 12>}, {pipeline_mode = #tpu.pipeline_mode<synchronous>, transform_indices = @transform_1, window_bounds = array<i64: 3, 12, 128>}, {transform_indices = @transform_2, window_bounds = array<i64: 1, 288, 1>}, {transform_indices = @transform_3, window_bounds = array<i64: 1, 288, 128>}, {transform_indices = @transform_4, window_bounds = array<i64: 1, 8, 128>}, {transform_indices = @transform_5, window_bounds = array<i64: 1, 8, 128>}]} {
    %c0_i32 = arith.constant 0 : i32
    %0 = arith.cmpi eq, %arg1, %c0_i32 : i32
    %1 = arith.extui %0 : i1 to i32
    %c0_i32_0 = arith.constant 0 : i32
    %2 = arith.cmpi ne, %1, %c0_i32_0 : i32
    scf.if %2 {
      %cst_51 = arith.constant 0.000000e+00 : f32
      %48 = vector.broadcast %cst_51 : f32 to vector<1x8x128xf32>
      %c0_52 = arith.constant 0 : index
      %c0_53 = arith.constant 0 : index
      %c0_54 = arith.constant 0 : index
      %49 = vector.load %arg6[%c0_52, %c0_53, %c0_54] : memref<1x8x128xf32, #tpu.memory_space<vmem>>, vector<1x8x128xf32>
      tpu.vector_store %arg6[%c0_52, %c0_53, %c0_54], %48 {strides = array<i32>} : memref<1x8x128xf32, #tpu.memory_space<vmem>>, vector<1x8x128xf32>,
      %cst_55 = arith.constant 0.000000e+00 : f32
      %50 = vector.broadcast %cst_55 : f32 to vector<1x8x128xf32>
      %c0_56 = arith.constant 0 : index
      %c0_57 = arith.constant 0 : index
      %c0_58 = arith.constant 0 : index
      %51 = vector.load %arg7[%c0_56, %c0_57, %c0_58] : memref<1x8x128xf32, #tpu.memory_space<vmem>>, vector<1x8x128xf32>
      tpu.vector_store %arg7[%c0_56, %c0_57, %c0_58], %50 {strides = array<i32>} : memref<1x8x128xf32, #tpu.memory_space<vmem>>, vector<1x8x128xf32>,
    } else {
    }
    %c0 = arith.constant 0 : index
    %c0_1 = arith.constant 0 : index
    %c0_2 = arith.constant 0 : index
    %c0_3 = arith.constant 0 : index
    %3 = vector.load %arg2[%c0, %c0_1, %c0_2, %c0_3] : memref<1x1x324x12xf32, #tpu.memory_space<vmem>>, vector<1x1x288x12xf32>
    %4 = vector.shape_cast %3 : vector<1x1x288x12xf32> to vector<288x12xf32>
    %c0_4 = arith.constant 0 : index
    %c0_5 = arith.constant 0 : index
    %c0_6 = arith.constant 0 : index
    %5 = vector.load %arg3[%c0_4, %c0_5, %c0_6] : memref<3x12x128xf32, #tpu.memory_space<vmem>>, vector<1x12x128xf32>
    %6 = vector.shape_cast %5 : vector<1x12x128xf32> to vector<12x128xf32>
    %cst = arith.constant dense<0.000000e+00> : vector<288x128xf32>
    %7 = tpu.matmul %4, %6, %cst {dimension_numbers = #tpu.dot_dimension_numbers<[1], [0], [0], [1], [0, 0, 1, 1], [], []>} : vector<288x12xf32>, vector<12x128xf32>, vector<288x128xf32> -> vector<288x128xf32>
    %c0_7 = arith.constant 0 : index
    %c0_8 = arith.constant 0 : index
    %8 = vector.load %arg8[%c0_7, %c0_8] : memref<288x128xf32, #tpu.memory_space<vmem>>, vector<288x128xf32>
    tpu.vector_store %arg8[%c0_7, %c0_8], %7 {strides = array<i32>} : memref<288x128xf32, #tpu.memory_space<vmem>>, vector<288x128xf32>,
    %c0_9 = arith.constant 0 : index
    %c0_10 = arith.constant 0 : index
    %c18 = arith.constant 18 : index
    %c0_11 = arith.constant 0 : index
    %9 = vector.load %arg2[%c0_9, %c0_10, %c18, %c0_11] : memref<1x1x324x12xf32, #tpu.memory_space<vmem>>, vector<1x1x288x12xf32>
    %10 = vector.shape_cast %9 : vector<1x1x288x12xf32> to vector<288x12xf32>
    %c1 = arith.constant 1 : index
    %c0_12 = arith.constant 0 : index
    %c0_13 = arith.constant 0 : index
    %11 = vector.load %arg3[%c1, %c0_12, %c0_13] : memref<3x12x128xf32, #tpu.memory_space<vmem>>, vector<1x12x128xf32>
    %12 = vector.shape_cast %11 : vector<1x12x128xf32> to vector<12x128xf32>
    %cst_14 = arith.constant dense<0.000000e+00> : vector<288x128xf32>
    %13 = tpu.matmul %10, %12, %cst_14 {dimension_numbers = #tpu.dot_dimension_numbers<[1], [0], [0], [1], [0, 0, 1, 1], [], []>} : vector<288x12xf32>, vector<12x128xf32>, vector<288x128xf32> -> vector<288x128xf32>
    %c0_15 = arith.constant 0 : index
    %c0_16 = arith.constant 0 : index
    %14 = vector.load %arg8[%c0_15, %c0_16] : memref<288x128xf32, #tpu.memory_space<vmem>>, vector<288x128xf32>
    %15 = arith.addf %14, %13 : vector<288x128xf32>
    %c0_17 = arith.constant 0 : index
    %c0_18 = arith.constant 0 : index
    %16 = vector.load %arg8[%c0_17, %c0_18] : memref<288x128xf32, #tpu.memory_space<vmem>>, vector<288x128xf32>
    tpu.vector_store %arg8[%c0_17, %c0_18], %15 {strides = array<i32>} : memref<288x128xf32, #tpu.memory_space<vmem>>, vector<288x128xf32>,
    %c0_19 = arith.constant 0 : index
    %c0_20 = arith.constant 0 : index
    %c36 = arith.constant 36 : index
    %c0_21 = arith.constant 0 : index
    %17 = vector.load %arg2[%c0_19, %c0_20, %c36, %c0_21] : memref<1x1x324x12xf32, #tpu.memory_space<vmem>>, vector<1x1x288x12xf32>
    %18 = vector.shape_cast %17 : vector<1x1x288x12xf32> to vector<288x12xf32>
    %c2 = arith.constant 2 : index
    %c0_22 = arith.constant 0 : index
    %c0_23 = arith.constant 0 : index
    %19 = vector.load %arg3[%c2, %c0_22, %c0_23] : memref<3x12x128xf32, #tpu.memory_space<vmem>>, vector<1x12x128xf32>
    %20 = vector.shape_cast %19 : vector<1x12x128xf32> to vector<12x128xf32>
    %cst_24 = arith.constant dense<0.000000e+00> : vector<288x128xf32>
    %21 = tpu.matmul %18, %20, %cst_24 {dimension_numbers = #tpu.dot_dimension_numbers<[1], [0], [0], [1], [0, 0, 1, 1], [], []>} : vector<288x12xf32>, vector<12x128xf32>, vector<288x128xf32> -> vector<288x128xf32>
    %c0_25 = arith.constant 0 : index
    %c0_26 = arith.constant 0 : index
    %22 = vector.load %arg8[%c0_25, %c0_26] : memref<288x128xf32, #tpu.memory_space<vmem>>, vector<288x128xf32>
    %23 = arith.addf %22, %21 : vector<288x128xf32>
    %c0_27 = arith.constant 0 : index
    %c0_28 = arith.constant 0 : index
    %24 = vector.load %arg8[%c0_27, %c0_28] : memref<288x128xf32, #tpu.memory_space<vmem>>, vector<288x128xf32>
    tpu.vector_store %arg8[%c0_27, %c0_28], %23 {strides = array<i32>} : memref<288x128xf32, #tpu.memory_space<vmem>>, vector<288x128xf32>,
    %c0_29 = arith.constant 0 : index
    %c0_30 = arith.constant 0 : index
    %25 = vector.load %arg8[%c0_29, %c0_30] : memref<288x128xf32, #tpu.memory_space<vmem>>, vector<288x128xf32>
    %c0_31 = arith.constant 0 : index
    %c0_32 = arith.constant 0 : index
    %c0_33 = arith.constant 0 : index
    %26 = vector.load %arg5[%c0_31, %c0_32, %c0_33] : memref<1x288x128xf32, #tpu.memory_space<vmem>>, vector<1x288x128xf32>
    %27 = vector.shape_cast %26 : vector<1x288x128xf32> to vector<288x128xf32>
    %28 = vector.shape_cast %25 : vector<288x128xf32> to vector<1x288x128xf32>
    tpu.vector_store %arg5[%c0_31, %c0_32, %c0_33], %28 {strides = array<i32>} : memref<1x288x128xf32, #tpu.memory_space<vmem>>, vector<1x288x128xf32>,
    %c0_34 = arith.constant 0 : index
    %c0_35 = arith.constant 0 : index
    %c0_36 = arith.constant 0 : index
    %29 = vector.load %arg4[%c0_34, %c0_35, %c0_36] : memref<1x288x1xf32, #tpu.memory_space<vmem>>, vector<1x288x1xf32>
    %30 = vector.shape_cast %29 : vector<1x288x1xf32> to vector<288x1xf32>
    %31 = vector.broadcast %30 : vector<288x1xf32> to vector<288x128xf32>
    %32 = arith.mulf %25, %31 : vector<288x128xf32>
    %c0_37 = arith.constant 0 : index
    %c0_38 = arith.constant 0 : index
    %c0_39 = arith.constant 0 : index
    %33 = vector.load %arg6[%c0_37, %c0_38, %c0_39] : memref<1x8x128xf32, #tpu.memory_space<vmem>>, vector<1x8x128xf32>
    %cst_40 = arith.constant dense<0.000000e+00> : vector<128xf32>
    %34 = vector.multi_reduction <add>, %32, %cst_40 [0] : vector<288x128xf32> to vector<128xf32>
    %35 = vector.shape_cast %34 : vector<128xf32> to vector<1x128xf32>
    %36 = vector.shape_cast %35 : vector<1x128xf32> to vector<1x1x128xf32>
    %37 = vector.broadcast %36 : vector<1x1x128xf32> to vector<1x8x128xf32>
    %38 = arith.addf %33, %37 : vector<1x8x128xf32>
    %c0_41 = arith.constant 0 : index
    %c0_42 = arith.constant 0 : index
    %c0_43 = arith.constant 0 : index
    %39 = vector.load %arg6[%c0_41, %c0_42, %c0_43] : memref<1x8x128xf32, #tpu.memory_space<vmem>>, vector<1x8x128xf32>
    tpu.vector_store %arg6[%c0_41, %c0_42, %c0_43], %38 {strides = array<i32>} : memref<1x8x128xf32, #tpu.memory_space<vmem>>, vector<1x8x128xf32>,
    %c0_44 = arith.constant 0 : index
    %c0_45 = arith.constant 0 : index
    %c0_46 = arith.constant 0 : index
    %40 = vector.load %arg7[%c0_44, %c0_45, %c0_46] : memref<1x8x128xf32, #tpu.memory_space<vmem>>, vector<1x8x128xf32>
    %41 = arith.mulf %32, %32 : vector<288x128xf32>
    %cst_47 = arith.constant dense<0.000000e+00> : vector<128xf32>
    %42 = vector.multi_reduction <add>, %41, %cst_47 [0] : vector<288x128xf32> to vector<128xf32>
    %43 = vector.shape_cast %42 : vector<128xf32> to vector<1x128xf32>
    %44 = vector.shape_cast %43 : vector<1x128xf32> to vector<1x1x128xf32>
    %45 = vector.broadcast %44 : vector<1x1x128xf32> to vector<1x8x128xf32>
    %46 = arith.addf %40, %45 : vector<1x8x128xf32>
    %c0_48 = arith.constant 0 : index
    %c0_49 = arith.constant 0 : index
    %c0_50 = arith.constant 0 : index
    %47 = vector.load %arg7[%c0_48, %c0_49, %c0_50] : memref<1x8x128xf32, #tpu.memory_space<vmem>>, vector<1x8x128xf32>
    tpu.vector_store %arg7[%c0_48, %c0_49, %c0_50], %46 {strides = array<i32>} : memref<1x8x128xf32, #tpu.memory_space<vmem>>, vector<1x8x128xf32>,
    return
  }
  func.func @transform_0(%arg0: i32, %arg1: i32) -> (i32, i32, i32, i32) {
    %c0_i32 = arith.constant 0 : i32
    %c0_i32_0 = arith.constant 0 : i32
    %c0_i32_1 = arith.constant 0 : i32
    return %arg0, %arg1, %c0_i32, %c0_i32_0 : i32, i32, i32, i32
  }
  func.func @transform_1(%arg0: i32, %arg1: i32) -> (i32, i32, i32) {
    %c0_i32 = arith.constant 0 : i32
    %c0_i32_0 = arith.constant 0 : i32
    %c0_i32_1 = arith.constant 0 : i32
    %c0_i32_2 = arith.constant 0 : i32
    return %c0_i32, %c0_i32_0, %c0_i32_1 : i32, i32, i32
  }
  func.func @transform_2(%arg0: i32, %arg1: i32) -> (i32, i32, i32) {
    %c0_i32 = arith.constant 0 : i32
    %c0_i32_0 = arith.constant 0 : i32
    %c0_i32_1 = arith.constant 0 : i32
    return %arg1, %c0_i32, %c0_i32_0 : i32, i32, i32
  }
  func.func @transform_3(%arg0: i32, %arg1: i32) -> (i32, i32, i32) {
    %c0_i32 = arith.constant 0 : i32
    %c0_i32_0 = arith.constant 0 : i32
    return %arg0, %arg1, %c0_i32 : i32, i32, i32
  }
  func.func @transform_4(%arg0: i32, %arg1: i32) -> (i32, i32, i32) {
    %c0_i32 = arith.constant 0 : i32
    %c0_i32_0 = arith.constant 0 : i32
    %c0_i32_1 = arith.constant 0 : i32
    return %arg0, %c0_i32, %c0_i32_0 : i32, i32, i32
  }
  func.func @transform_5(%arg0: i32, %arg1: i32) -> (i32, i32, i32) {
    %c0_i32 = arith.constant 0 : i32
    %c0_i32_0 = arith.constant 0 : i32
    %c0_i32_1 = arith.constant 0 : i32
    return %arg0, %c0_i32, %c0_i32_0 : i32, i32, i32
  }
}

module attributes {stable_mosaic.version = 11 : i64} {
  func.func @_bn_relu_kernel(%arg0: i32, %arg1: memref<576x128xf32, #tpu.memory_space<vmem>>, %arg2: memref<1x128xf32, #tpu.memory_space<vmem>>, %arg3: memref<1x128xf32, #tpu.memory_space<vmem>>, %arg4: memref<576x128xf32, #tpu.memory_space<vmem>>) attributes {dimension_semantics = [#tpu.dimension_semantics<parallel>], iteration_bounds = array<i64: 1>, scalar_prefetch = 0 : i64, scratch_operands = 0 : i64, tpu.core_type = #tpu.core_type<tc>, window_params = [{transform_indices = @transform_0, window_bounds = array<i64: 576, 128>}, {pipeline_mode = #tpu.pipeline_mode<synchronous>, transform_indices = @transform_1, window_bounds = array<i64: 1, 128>}, {pipeline_mode = #tpu.pipeline_mode<synchronous>, transform_indices = @transform_2, window_bounds = array<i64: 1, 128>}, {transform_indices = @transform_3, window_bounds = array<i64: 576, 128>}]} {
    %c0 = arith.constant 0 : index
    %c0_0 = arith.constant 0 : index
    %0 = vector.load %arg1[%c0, %c0_0] : memref<576x128xf32, #tpu.memory_space<vmem>>, vector<576x128xf32>
    %c0_1 = arith.constant 0 : index
    %c0_2 = arith.constant 0 : index
    %1 = vector.load %arg2[%c0_1, %c0_2] : memref<1x128xf32, #tpu.memory_space<vmem>>, vector<1x128xf32>
    %2 = vector.broadcast %1 : vector<1x128xf32> to vector<576x128xf32>
    %3 = arith.mulf %0, %2 : vector<576x128xf32>
    %c0_3 = arith.constant 0 : index
    %c0_4 = arith.constant 0 : index
    %4 = vector.load %arg3[%c0_3, %c0_4] : memref<1x128xf32, #tpu.memory_space<vmem>>, vector<1x128xf32>
    %5 = vector.broadcast %4 : vector<1x128xf32> to vector<576x128xf32>
    %6 = arith.addf %3, %5 : vector<576x128xf32>
    %cst = arith.constant 0.000000e+00 : f32
    %7 = vector.broadcast %cst : f32 to vector<576x128xf32>
    %8 = arith.maximumf %6, %7 : vector<576x128xf32>
    %c0_5 = arith.constant 0 : index
    %c0_6 = arith.constant 0 : index
    %9 = vector.load %arg4[%c0_5, %c0_6] : memref<576x128xf32, #tpu.memory_space<vmem>>, vector<576x128xf32>
    tpu.vector_store %arg4[%c0_5, %c0_6], %8 {strides = array<i32>} : memref<576x128xf32, #tpu.memory_space<vmem>>, vector<576x128xf32>,
    return
  }
  func.func @transform_0(%arg0: i32) -> (i32, i32) {
    %c0_i32 = arith.constant 0 : i32
    %c0_i32_0 = arith.constant 0 : i32
    return %arg0, %c0_i32 : i32, i32
  }
  func.func @transform_1(%arg0: i32) -> (i32, i32) {
    %c0_i32 = arith.constant 0 : i32
    %c0_i32_0 = arith.constant 0 : i32
    %c0_i32_1 = arith.constant 0 : i32
    return %c0_i32, %c0_i32_0 : i32, i32
  }
  func.func @transform_2(%arg0: i32) -> (i32, i32) {
    %c0_i32 = arith.constant 0 : i32
    %c0_i32_0 = arith.constant 0 : i32
    %c0_i32_1 = arith.constant 0 : i32
    return %c0_i32, %c0_i32_0 : i32, i32
  }
  func.func @transform_3(%arg0: i32) -> (i32, i32) {
    %c0_i32 = arith.constant 0 : i32
    %c0_i32_0 = arith.constant 0 : i32
    return %arg0, %c0_i32 : i32, i32
  }
}

</mosaic_0001>

<bundles_post_ra>
// kernel: conv_bn_relu.3
= control target key start
LH: loop header
LB: loop body
LE: loop exit
PB: predicated region body
PF: predicated region fallthrough
CT: control target
= control target key end

     0   :  { %s1027_s0 = inlined_call_operand.vmem [shape: f32[576,128], index: 0, kind: input, shape index: {}]   ;;  %s1028_s1 = inlined_call_operand.vmem [shape: f32[1,128], index: 1, kind: input, shape index: {}]   ;;  %s1029_s2 = inlined_call_operand.vmem [shape: f32[1,128], index: 2, kind: input, shape index: {}]   ;;  %s1030_s3 = inlined_call_operand.vmem [shape: f32[576,128], index: 3, kind: output, shape index: {}]  }
   0x1   :  { %v14_v0 = vld [vmem:[%s1027_s0] sm:$0xff]  ;;  %v15_v3 = vld [vmem:[%s1027_s0 + $0x8] sm:$0xff]  ;;  %v16_v6 = vld [vmem:[%s1027_s0 + $0x10] sm:$0xff] }
   0x2   :  { %v414_v1 = vld [vmem:[%s1028_s1] ss:$0 sm:$0xff]  ;;  %v17_v7 = vld [vmem:[%s1027_s0 + $0x18] sm:$0xff]  ;;  %v19_v12 = vld [vmem:[%s1027_s0 + $0x28] sm:$0xff] }
   0x3   :  { %v419_v2 = vld [vmem:[%s1029_s2] ss:$0 sm:$0xff]  ;;  %v90_v4 = vmul.f32 %v414_v1, %v14_v0  ;;  %v91_v5 = vmul.f32 %v414_v1, %v15_v3  ;;  %v92_v9 = vmul.f32 %v414_v1, %v16_v6  ;;  %v93_v10 = vmul.f32 %v414_v1, %v17_v7  ;;  %v20_v13 = vld [vmem:[%s1027_s0 + $0x30] sm:$0xff]  ;;  %v21_v14 = vld [vmem:[%s1027_s0 + $0x38] sm:$0xff] }
   0x4   :  { %v18_v8 = vld [vmem:[%s1027_s0 + $0x20] sm:$0xff]  ;;  %v95_v17 = vmul.f32 %v414_v1, %v19_v12  ;;  %v96_v18 = vmul.f32 %v414_v1, %v20_v13  ;;  %v97_v22 = vmul.f32 %v414_v1, %v21_v14  ;;  %v23_v24 = vld [vmem:[%s1027_s0 + $0x48] sm:$0xff]  ;;  %v24_v29 = vld [vmem:[%s1027_s0 + $0x50] sm:$0xff] }
   0x5   :  { %v94_v11 = vmul.f32 %v414_v1, %v18_v8  ;;  %v166_v15 = vadd.f32 %v419_v2, %v90_v4  ;;  %v167_v16 = vadd.f32 %v419_v2, %v91_v5  ;;  %v168_v19 = vadd.f32 %v419_v2, %v92_v9  ;;  %v22_v23 = vld [vmem:[%s1027_s0 + $0x40] sm:$0xff]  ;;  %v25_v30 = vld [vmem:[%s1027_s0 + $0x58] sm:$0xff]  ;;  %v27_v35 = vld [vmem:[%s1027_s0 + $0x68] sm:$0xff] }
   0x6   :  { %v169_v20 = vadd.f32 %v419_v2, %v93_v10  ;;  %v171_v27 = vadd.f32 %v419_v2, %v95_v17  ;;  %v172_v28 = vadd.f32 %v419_v2, %v96_v18  ;;  %v26_v31 = vld [vmem:[%s1027_s0 + $0x60] sm:$0xff]  ;;  %v173_v34 = vadd.f32 %v419_v2, %v97_v22  ;;  %v28_v36 = vld [vmem:[%s1027_s0 + $0x70] sm:$0xff]  ;;  %v29_v41 = vld [vmem:[%s1027_s0 + $0x78] sm:$0xff] }
   0x7   :  { %v170_v21 = vadd.f32 %v419_v2, %v94_v11  ;;  %v238_v25 = vmax.f32 %v166_v15, 0.0  ;;  %v239_v26 = vmax.f32 %v167_v16, 0.0  ;;  %v240_v32 = vmax.f32 %v168_v19, 0.0  ;;  %v30_v54 = vld [vmem:[%s1027_s0 + $0x80] sm:$0xff]  ;;  %v31_v55 = vld [vmem:[%s1027_s0 + $0x88] sm:$0xff]  ;;  %v32_v58 = vld [vmem:[%s1027_s0 + $0x90] sm:$0xff] }
   0x8   :  { %v241_v33 = vmax.f32 %v169_v20, 0.0  ;;  %v243_v38 = vmax.f32 %v171_v27, 0.0  ;;  %v98_v39 = vmul.f32 %v414_v1, %v22_v23  ;;  %v99_v40 = vmul.f32 %v414_v1, %v23_v24  ;;  %v33_v59 = vld [vmem:[%s1027_s0 + $0x98] sm:$0xff]  ;;  %v34_v62 = vld [vmem:[%s1027_s0 + $0xa0] sm:$0xff]  ;;  %v35_v5 = vld [vmem:[%s1027_s0 + $0xa8] sm:$0xff] }
   0x9   :  { %310 = vst [vmem:[%s1030_s3] sm:$0xff] %v238_v25  ;;  %v242_v37 = vmax.f32 %v170_v21, 0.0  ;;  %v244_v42 = vmax.f32 %v172_v28, 0.0  ;;  %v100_v43 = vmul.f32 %v414_v1, %v24_v29  ;;  %v101_v44 = vmul.f32 %v414_v1, %v25_v30  ;;  %v36_v10 = vld [vmem:[%s1027_s0 + $0xb0] sm:$0xff]  ;;  %v37_v14 = vld [vmem:[%s1027_s0 + $0xb8] sm:$0xff]  ;;  %v38_v18 = vld [vmem:[%s1027_s0 + $0xc0] sm:$0xff] }
   0xa   :  { %311 = vst [vmem:[%s1030_s3 + $0x8] sm:$0xff] %v239_v26  ;;  %v102_v45 = vmul.f32 %v414_v1, %v26_v31  ;;  %v174_v46 = vadd.f32 %v419_v2, %v98_v39  ;;  %v175_v47 = vadd.f32 %v419_v2, %v99_v40  ;;  %v103_v48 = vmul.f32 %v414_v1, %v27_v35  ;;  %v39_v22 = vld [vmem:[%s1027_s0 + $0xc8] sm:$0xff]  ;;  %v40_v26 = vld [vmem:[%s1027_s0 + $0xd0] sm:$0xff]  ;;  %v41_v30 = vld [vmem:[%s1027_s0 + $0xd8] sm:$0xff] }
   0xb   :  { %312 = vst [vmem:[%s1030_s3 + $0x10] sm:$0xff] %v240_v32  ;;  %v104_v49 = vmul.f32 %v414_v1, %v28_v36  ;;  %v245_v50 = vmax.f32 %v173_v34, 0.0  ;;  %v176_v51 = vadd.f32 %v419_v2, %v100_v43  ;;  %v177_v52 = vadd.f32 %v419_v2, %v101_v44  ;;  %v42_v34 = vld [vmem:[%s1027_s0 + $0xe0] sm:$0xff] }
   0xc   :  { %313 = vst [vmem:[%s1030_s3 + $0x18] sm:$0xff] %v241_v33  ;;  %v105_v53 = vmul.f32 %v414_v1, %v29_v41  ;;  %v246_v56 = vmax.f32 %v174_v46, 0.0  ;;  %v178_v57 = vadd.f32 %v419_v2, %v102_v45  ;;  %v247_v60 = vmax.f32 %v175_v47, 0.0  ;;  %v45_v46 = vld [vmem:[%s1027_s0 + $0xf8] sm:$0xff] }
   0xd   :  { %314 = vst [vmem:[%s1030_s3 + $0x20] sm:$0xff] %v242_v37  ;;  %v179_v61 = vadd.f32 %v419_v2, %v103_v48  ;;  %v248_v63 = vmax.f32 %v176_v51, 0.0  ;;  %v180_v0 = vadd.f32 %v419_v2, %v104_v49  ;;  %v106_v3 = vmul.f32 %v414_v1, %v30_v54  ;;  %v47_v51 = vld [vmem:[%s1027_s0 + $0x108] sm:$0xff] }
   0xe   :  { %315 = vst [vmem:[%s1030_s3 + $0x28] sm:$0xff] %v243_v38  ;;  %v107_v4 = vmul.f32 %v414_v1, %v31_v55  ;;  %v249_v6 = vmax.f32 %v177_v52, 0.0  ;;  %v181_v7 = vadd.f32 %v419_v2, %v105_v53  ;;  %v108_v8 = vmul.f32 %v414_v1, %v32_v58  ;;  %v43_v38 = vld [vmem:[%s1027_s0 + $0xe8] sm:$0xff]  ;;  %v48_v55 = vld [vmem:[%s1027_s0 + $0x110] sm:$0xff] }
   0xf   :  { %316 = vst [vmem:[%s1030_s3 + $0x30] sm:$0xff] %v244_v42  ;;  %v109_v9 = vmul.f32 %v414_v1, %v33_v59  ;;  %v250_v11 = vmax.f32 %v178_v57, 0.0  ;;  %v182_v12 = vadd.f32 %v419_v2, %v106_v3  ;;  %v110_v13 = vmul.f32 %v414_v1, %v34_v62  ;;  %v44_v42 = vld [vmem:[%s1027_s0 + $0xf0] sm:$0xff]  ;;  %v49_v59 = vld [vmem:[%s1027_s0 + $0x118] sm:$0xff] }
  0x10   :  { %317 = vst [vmem:[%s1030_s3 + $0x38] sm:$0xff] %v245_v50  ;;  %v251_v15 = vmax.f32 %v179_v61, 0.0  ;;  %v183_v16 = vadd.f32 %v419_v2, %v107_v4  ;;  %v111_v17 = vmul.f32 %v414_v1, %v35_v5  ;;  %v252_v19 = vmax.f32 %v180_v0, 0.0  ;;  %v46_v50 = vld [vmem:[%s1027_s0 + $0x100] sm:$0xff] }
  0x11   :  { %318 = vst [vmem:[%s1030_s3 + $0x40] sm:$0xff] %v246_v56  ;;  %v184_v20 = vadd.f32 %v419_v2, %v108_v8  ;;  %v112_v21 = vmul.f32 %v414_v1, %v36_v10  ;;  %v253_v23 = vmax.f32 %v181_v7, 0.0  ;;  %v185_v24 = vadd.f32 %v419_v2, %v109_v9  ;;  %v50_v5 = vld [vmem:[%s1027_s0 + $0x120] sm:$0xff]  ;;  %v51_v9 = vld [vmem:[%s1027_s0 + $0x128] sm:$0xff]  ;;  %v52_v10 = vld [vmem:[%s1027_s0 + $0x130] sm:$0xff] }
  0x12   :  { %319 = vst [vmem:[%s1030_s3 + $0x48] sm:$0xff] %v247_v60  ;;  %v113_v25 = vmul.f32 %v414_v1, %v37_v14  ;;  %v254_v27 = vmax.f32 %v182_v12, 0.0  ;;  %v186_v28 = vadd.f32 %v419_v2, %v110_v13  ;;  %v114_v29 = vmul.f32 %v414_v1, %v38_v18 }
  0x13   :  { %320 = vst [vmem:[%s1030_s3 + $0x50] sm:$0xff] %v248_v63  ;;  %v255_v31 = vmax.f32 %v183_v16, 0.0  ;;  %v187_v32 = vadd.f32 %v419_v2, %v111_v17  ;;  %v115_v33 = vmul.f32 %v414_v1, %v39_v22  ;;  %v256_v35 = vmax.f32 %v184_v20, 0.0  ;;  %v53_v17 = vld [vmem:[%s1027_s0 + $0x138] sm:$0xff]  ;;  %v54_v22 = vld [vmem:[%s1027_s0 + $0x140] sm:$0xff] }
  0x14   :  { %321 = vst [vmem:[%s1030_s3 + $0x58] sm:$0xff] %v249_v6  ;;  %v188_v36 = vadd.f32 %v419_v2, %v112_v21  ;;  %v116_v37 = vmul.f32 %v414_v1, %v40_v26  ;;  %v257_v39 = vmax.f32 %v185_v24, 0.0  ;;  %v189_v40 = vadd.f32 %v419_v2, %v113_v25  ;;  %v55_v25 = vld [vmem:[%s1027_s0 + $0x148] sm:$0xff] }
  0x15   :  { %322 = vst [vmem:[%s1030_s3 + $0x60] sm:$0xff] %v250_v11  ;;  %v117_v41 = vmul.f32 %v414_v1, %v41_v30  ;;  %v258_v43 = vmax.f32 %v186_v28, 0.0  ;;  %v190_v44 = vadd.f32 %v419_v2, %v114_v29  ;;  %v118_v45 = vmul.f32 %v414_v1, %v42_v34  ;;  %v56_v28 = vld [vmem:[%s1027_s0 + $0x150] sm:$0xff]  ;;  %v57_v29 = vld [vmem:[%s1027_s0 + $0x158] sm:$0xff]  ;;  %v58_v30 = vld [vmem:[%s1027_s0 + $0x160] sm:$0xff] }
  0x16   :  { %323 = vst [vmem:[%s1030_s3 + $0x68] sm:$0xff] %v251_v15  ;;  %v259_v47 = vmax.f32 %v187_v32, 0.0  ;;  %v191_v48 = vadd.f32 %v419_v2, %v115_v33  ;;  %v119_v49 = vmul.f32 %v414_v1, %v43_v38  ;;  %v260_v52 = vmax.f32 %v188_v36, 0.0  ;;  %v60_v36 = vld [vmem:[%s1027_s0 + $0x170] sm:$0xff] }
  0x17   :  { %324 = vst [vmem:[%s1030_s3 + $0x70] sm:$0xff] %v252_v19  ;;  %v192_v53 = vadd.f32 %v419_v2, %v116_v37  ;;  %v120_v54 = vmul.f32 %v414_v1, %v44_v42  ;;  %v261_v56 = vmax.f32 %v189_v40, 0.0  ;;  %v193_v57 = vadd.f32 %v419_v2, %v117_v41  ;;  %v61_v37 = vld [vmem:[%s1027_s0 + $0x178] sm:$0xff] }
  0x18   :  { %325 = vst [vmem:[%s1030_s3 + $0x78] sm:$0xff] %v253_v23  ;;  %v121_v58 = vmul.f32 %v414_v1, %v45_v46  ;;  %v262_v60 = vmax.f32 %v190_v44, 0.0  ;;  %v194_v61 = vadd.f32 %v419_v2, %v118_v45  ;;  %v122_v62 = vmul.f32 %v414_v1, %v46_v50  ;;  %v62_v46 = vld [vmem:[%s1027_s0 + $0x180] sm:$0xff] }
  0x19   :  { %326 = vst [vmem:[%s1030_s3 + $0x80] sm:$0xff] %v254_v27  ;;  %v123_v63 = vmul.f32 %v414_v1, %v47_v51  ;;  %v263_v0 = vmax.f32 %v191_v48, 0.0  ;;  %v195_v3 = vadd.f32 %v419_v2, %v119_v49  ;;  %v124_v4 = vmul.f32 %v414_v1, %v48_v55 }
  0x1a   :  { %327 = vst [vmem:[%s1030_s3 + $0x88] sm:$0xff] %v255_v31  ;;  %v264_v6 = vmax.f32 %v192_v53, 0.0  ;;  %v196_v7 = vadd.f32 %v419_v2, %v120_v54  ;;  %v125_v8 = vmul.f32 %v414_v1, %v49_v59  ;;  %v265_v11 = vmax.f32 %v193_v57, 0.0  ;;  %v65_v59 = vld [vmem:[%s1027_s0 + $0x198] sm:$0xff] }
  0x1b   :  { %328 = vst [vmem:[%s1030_s3 + $0x90] sm:$0xff] %v256_v35  ;;  %v197_v12 = vadd.f32 %v419_v2, %v121_v58  ;;  %v266_v13 = vmax.f32 %v194_v61, 0.0  ;;  %v198_v14 = vadd.f32 %v419_v2, %v122_v62  ;;  %v199_v15 = vadd.f32 %v419_v2, %v123_v63  ;;  %v59_v35 = vld [vmem:[%s1027_s0 + $0x168] sm:$0xff]  ;;  %v64_v58 = vld [vmem:[%s1027_s0 + $0x190] sm:$0xff] }
  0x1c   :  { %329 = vst [vmem:[%s1030_s3 + $0x98] sm:$0xff] %v257_v39  ;;  %v126_v16 = vmul.f32 %v414_v1, %v50_v5  ;;  %v267_v18 = vmax.f32 %v195_v3, 0.0  ;;  %v200_v19 = vadd.f32 %v419_v2, %v124_v4  ;;  %v127_v20 = vmul.f32 %v414_v1, %v51_v9  ;;  %v67_v3 = vld [vmem:[%s1027_s0 + $0x1a8] sm:$0xff] }
  0x1d   :  { %330 = vst [vmem:[%s1030_s3 + $0xa0] sm:$0xff] %v258_v43  ;;  %v128_v21 = vmul.f32 %v414_v1, %v52_v10  ;;  %v268_v23 = vmax.f32 %v196_v7, 0.0  ;;  %v201_v24 = vadd.f32 %v419_v2, %v125_v8  ;;  %v269_v26 = vmax.f32 %v197_v12, 0.0  ;;  %v68_v8 = vld [vmem:[%s1027_s0 + $0x1b0] sm:$0xff] }
  0x1e   :  { %331 = vst [vmem:[%s1030_s3 + $0xa8] sm:$0xff] %v259_v47  ;;  %v129_v27 = vmul.f32 %v414_v1, %v53_v17  ;;  %v270_v31 = vmax.f32 %v198_v14, 0.0  ;;  %v271_v32 = vmax.f32 %v199_v15, 0.0  ;;  %v202_v33 = vadd.f32 %v419_v2, %v126_v16  ;;  %v63_v47 = vld [vmem:[%s1027_s0 + $0x188] sm:$0xff] }
  0x1f   :  { %332 = vst [vmem:[%s1030_s3 + $0xb0] sm:$0xff] %v260_v52  ;;  %v130_v34 = vmul.f32 %v414_v1, %v54_v22  ;;  %v272_v38 = vmax.f32 %v200_v19, 0.0  ;;  %v203_v39 = vadd.f32 %v419_v2, %v127_v20  ;;  %v204_v40 = vadd.f32 %v419_v2, %v128_v21 }
  0x20   :  { %333 = vst [vmem:[%s1030_s3 + $0xb8] sm:$0xff] %v261_v56  ;;  %v131_v41 = vmul.f32 %v414_v1, %v55_v25  ;;  %v273_v42 = vmax.f32 %v201_v24, 0.0  ;;  %v132_v43 = vmul.f32 %v414_v1, %v56_v28  ;;  %v133_v44 = vmul.f32 %v414_v1, %v57_v29  ;;  %v71_v24 = vld [vmem:[%s1027_s0 + $0x1c8] sm:$0xff]  ;;  %v78_v29 = vld [vmem:[%s1027_s0 + $0x200] sm:$0xff] }
  0x21   :  { %334 = vst [vmem:[%s1030_s3 + $0xc0] sm:$0xff] %v262_v60  ;;  %v134_v45 = vmul.f32 %v414_v1, %v58_v30  ;;  %v205_v48 = vadd.f32 %v419_v2, %v129_v27  ;;  %v135_v49 = vmul.f32 %v414_v1, %v59_v35  ;;  %v136_v50 = vmul.f32 %v414_v1, %v60_v36  ;;  %v66_v60 = vld [vmem:[%s1027_s0 + $0x1a0] sm:$0xff]  ;;  %v79_v30 = vld [vmem:[%s1027_s0 + $0x208] sm:$0xff]  ;;  %v80_v35 = vld [vmem:[%s1027_s0 + $0x210] sm:$0xff] }
  0x22   :  { %335 = vst [vmem:[%s1030_s3 + $0xc8] sm:$0xff] %v263_v0  ;;  %v137_v51 = vmul.f32 %v414_v1, %v61_v37  ;;  %v274_v52 = vmax.f32 %v202_v33, 0.0  ;;  %v206_v53 = vadd.f32 %v419_v2, %v130_v34  ;;  %v275_v54 = vmax.f32 %v203_v39, 0.0  ;;  %v81_v36 = vld [vmem:[%s1027_s0 + $0x218] sm:$0xff]  ;;  %v82_v37 = vld [vmem:[%s1027_s0 + $0x220] sm:$0xff] }
  0x23   :  { %336 = vst [vmem:[%s1030_s3 + $0xd0] sm:$0xff] %v264_v6  ;;  %v207_v55 = vadd.f32 %v419_v2, %v131_v41  ;;  %v138_v56 = vmul.f32 %v414_v1, %v62_v46  ;;  %v139_v57 = vmul.f32 %v414_v1, %v63_v47  ;;  %v276_v61 = vmax.f32 %v204_v40, 0.0 }
  0x24   :  { %337 = vst [vmem:[%s1030_s3 + $0xd8] sm:$0xff] %v265_v11  ;;  %v208_v62 = vadd.f32 %v419_v2, %v132_v43  ;;  %v209_v63 = vadd.f32 %v419_v2, %v133_v44  ;;  %v210_v0 = vadd.f32 %v419_v2, %v134_v45  ;;  %v277_v4 = vmax.f32 %v205_v48, 0.0  ;;  %v84_v43 = vld [vmem:[%s1027_s0 + $0x230] sm:$0xff]  ;;  %v85_v48 = vld [vmem:[%s1027_s0 + $0x238] sm:$0xff] }
  0x25   :  { %338 = vst [vmem:[%s1030_s3 + $0xe0] sm:$0xff] %v266_v13  ;;  %v784_v5 = vadd.f32 %v419_v2, %v135_v49  ;;  %v787_v6 = vadd.f32 %v419_v2, %v136_v50  ;;  %v790_v7 = vadd.f32 %v419_v2, %v137_v51  ;;  %v278_v9 = vmax.f32 %v206_v53, 0.0  ;;  %v77_v13 = vld [vmem:[%s1027_s0 + $0x1f8] sm:$0xff]  ;;  %v72_v50 = vld [vmem:[%s1027_s0 + $0x1d0] sm:$0xff] }
  0x26   :  { %339 = vst [vmem:[%s1030_s3 + $0xe8] sm:$0xff] %v267_v18  ;;  %v140_v10 = vmul.f32 %v414_v1, %v64_v58  ;;  %v141_v11 = vmul.f32 %v414_v1, %v65_v59  ;;  %v142_v12 = vmul.f32 %v414_v1, %v66_v60  ;;  %v279_v14 = vmax.f32 %v207_v55, 0.0  ;;  %v69_v18 = vld [vmem:[%s1027_s0 + $0x1b8] sm:$0xff]  ;;  %v74_v59 = vld [vmem:[%s1027_s0 + $0x1e0] sm:$0xff] }
  0x27   :  { %340 = vst [vmem:[%s1030_s3 + $0xf0] sm:$0xff] %v268_v23  ;;  %v808_v15 = vadd.f32 %v419_v2, %v138_v56  ;;  %v811_v16 = vadd.f32 %v419_v2, %v139_v57  ;;  %v143_v17 = vmul.f32 %v414_v1, %v67_v3  ;;  %v280_v19 = vmax.f32 %v208_v62, 0.0  ;;  %v70_v23 = vld [vmem:[%s1027_s0 + $0x1c0] sm:$0xff] }
  0x28   :  { %341 = vst [vmem:[%s1030_s3 + $0xf8] sm:$0xff] %v269_v26  ;;  %v281_v20 = vmax.f32 %v209_v63, 0.0  ;;  %v282_v21 = vmax.f32 %v210_v0, 0.0  ;;  %v144_v22 = vmul.f32 %v414_v1, %v68_v8  ;;  %v283_v25 = vmax.f32 %v784_v5, 0.0 }
  0x29   :  { %342 = vst [vmem:[%s1030_s3 + $0x100] sm:$0xff] %v270_v31  ;;  %v284_v26 = vmax.f32 %v787_v6, 0.0  ;;  %v285_v27 = vmax.f32 %v790_v7, 0.0  ;;  %v153_v28 = vmul.f32 %v414_v1, %v77_v13  ;;  %v216_v31 = vadd.f32 %v419_v2, %v140_v10  ;;  %v76_v10 = vld [vmem:[%s1027_s0 + $0x1f0] sm:$0xff] }
  0x2a   :  { %343 = vst [vmem:[%s1030_s3 + $0x108] sm:$0xff] %v271_v32  ;;  %v217_v32 = vadd.f32 %v419_v2, %v141_v11  ;;  %v846_v33 = vadd.f32 %v419_v2, %v142_v12  ;;  %v145_v34 = vmul.f32 %v414_v1, %v69_v18  ;;  %v287_v39 = vmax.f32 %v811_v16, 0.0 }
  0x2b   :  { %344 = vst [vmem:[%s1030_s3 + $0x110] sm:$0xff] %v272_v38  ;;  %v286_v38 = vmax.f32 %v808_v15, 0.0  ;;  %v219_v40 = vadd.f32 %v419_v2, %v143_v17  ;;  %v865_v41 = vadd.f32 %v419_v2, %v153_v28  ;;  %v220_v44 = vadd.f32 %v419_v2, %v144_v22 }
  0x2c   :  { %345 = vst [vmem:[%s1030_s3 + $0x118] sm:$0xff] %v273_v42  ;;  %v83_v42 = vld [vmem:[%s1027_s0 + $0x228] sm:$0xff]  ;;  %v146_v45 = vmul.f32 %v414_v1, %v70_v23  ;;  %v154_v46 = vmul.f32 %v414_v1, %v78_v29  ;;  %v155_v47 = vmul.f32 %v414_v1, %v79_v30  ;;  %v147_v49 = vmul.f32 %v414_v1, %v71_v24 }
  0x2d   :  { %346 = vst [vmem:[%s1030_s3 + $0x120] sm:$0xff] %v274_v52  ;;  %v156_v51 = vmul.f32 %v414_v1, %v80_v35  ;;  %v157_v52 = vmul.f32 %v414_v1, %v81_v36  ;;  %v158_v53 = vmul.f32 %v414_v1, %v82_v37  ;;  %v159_v57 = vmul.f32 %v414_v1, %v83_v42 }
  0x2e   :  { %347 = vst [vmem:[%s1030_s3 + $0x128] sm:$0xff] %v275_v54  ;;  %v73_v54 = vld [vmem:[%s1027_s0 + $0x1d8] sm:$0xff]  ;;  %v900_v55 = vadd.f32 %v419_v2, %v154_v46  ;;  %v903_v56 = vadd.f32 %v419_v2, %v155_v47  ;;  %v160_v58 = vmul.f32 %v414_v1, %v84_v43  ;;  %v161_v63 = vmul.f32 %v414_v1, %v85_v48 }
  0x2f   :  { %348 = vst [vmem:[%s1030_s3 + $0x130] sm:$0xff] %v276_v61  ;;  %v232_v60 = vadd.f32 %v419_v2, %v156_v51  ;;  %v915_v61 = vadd.f32 %v419_v2, %v157_v52  ;;  %v918_v62 = vadd.f32 %v419_v2, %v158_v53  ;;  %v288_v0 = vmax.f32 %v216_v31, 0.0 }
  0x30   :  { %349 = vst [vmem:[%s1030_s3 + $0x138] sm:$0xff] %v277_v4  ;;  %v148_v3 = vmul.f32 %v414_v1, %v72_v50  ;;  %v75_v4 = vld [vmem:[%s1027_s0 + $0x1e8] sm:$0xff]  ;;  %v235_v5 = vadd.f32 %v419_v2, %v159_v57  ;;  %v236_v6 = vadd.f32 %v419_v2, %v160_v58  ;;  %v289_v7 = vmax.f32 %v217_v32, 0.0 }
  0x31   :  { %350 = vst [vmem:[%s1030_s3 + $0x140] sm:$0xff] %v278_v9  ;;  %v221_v8 = vadd.f32 %v419_v2, %v145_v34  ;;  %v149_v9 = vmul.f32 %v414_v1, %v73_v54  ;;  %v237_v11 = vadd.f32 %v419_v2, %v161_v63  ;;  %v290_v12 = vmax.f32 %v846_v33, 0.0 }
  0x32   :  { %351 = vst [vmem:[%s1030_s3 + $0x148] sm:$0xff] %v279_v14  ;;  %v222_v13 = vadd.f32 %v419_v2, %v146_v45  ;;  %v150_v14 = vmul.f32 %v414_v1, %v74_v59  ;;  %v291_v15 = vmax.f32 %v219_v40, 0.0  ;;  %v223_v16 = vadd.f32 %v419_v2, %v147_v49 }
  0x33   :  { %352 = vst [vmem:[%s1030_s3 + $0x150] sm:$0xff] %v280_v19  ;;  %v151_v17 = vmul.f32 %v414_v1, %v75_v4  ;;  %v292_v18 = vmax.f32 %v220_v44, 0.0  ;;  %v224_v19 = vadd.f32 %v419_v2, %v148_v3  ;;  %v225_v22 = vadd.f32 %v419_v2, %v149_v9 }
  0x34   :  { %353 = vst [vmem:[%s1030_s3 + $0x158] sm:$0xff] %v281_v20  ;;  %v152_v20 = vmul.f32 %v414_v1, %v76_v10  ;;  %v294_v23 = vmax.f32 %v222_v13, 0.0  ;;  %v226_v24 = vadd.f32 %v419_v2, %v150_v14  ;;  %v301_v31 = vmax.f32 %v865_v41, 0.0 }
  0x35   :  { %354 = vst [vmem:[%s1030_s3 + $0x160] sm:$0xff] %v282_v21  ;;  %v293_v21 = vmax.f32 %v221_v8, 0.0  ;;  %v227_v1 = vadd.f32 %v419_v2, %v151_v17  ;;  %v297_v28 = vmax.f32 %v225_v22, 0.0  ;;  %v302_v32 = vmax.f32 %v900_v55, 0.0 }
  0x36   :  { %355 = vst [vmem:[%s1030_s3 + $0x168] sm:$0xff] %v283_v25  ;;  %v295_v25 = vmax.f32 %v223_v16, 0.0  ;;  %v298_v29 = vmax.f32 %v226_v24, 0.0  ;;  %v303_v33 = vmax.f32 %v903_v56, 0.0  ;;  %v304_v34 = vmax.f32 %v232_v60, 0.0 }
  0x37   :  { %356 = vst [vmem:[%s1030_s3 + $0x170] sm:$0xff] %v284_v26  ;;  %v296_v26 = vmax.f32 %v224_v19, 0.0  ;;  %v299_v30 = vmax.f32 %v227_v1, 0.0  ;;  %v305_v35 = vmax.f32 %v915_v61, 0.0  ;;  %v306_v36 = vmax.f32 %v918_v62, 0.0 }
  0x38   :  { %357 = vst [vmem:[%s1030_s3 + $0x178] sm:$0xff] %v285_v27  ;;  %v228_v27 = vadd.f32 %v419_v2, %v152_v20  ;;  %v307_v37 = vmax.f32 %v235_v5, 0.0 }
  0x39   :  { %358 = vst [vmem:[%s1030_s3 + $0x180] sm:$0xff] %v286_v38  ;;  %v308_v38 = vmax.f32 %v236_v6, 0.0 }
  0x3a   :  { %359 = vst [vmem:[%s1030_s3 + $0x188] sm:$0xff] %v287_v39  ;;  %v300_v2 = vmax.f32 %v228_v27, 0.0  ;;  %v309_v39 = vmax.f32 %v237_v11, 0.0 }
  0x3b   :  { %360 = vst [vmem:[%s1030_s3 + $0x190] sm:$0xff] %v288_v0 }
  0x3c   :  { %361 = vst [vmem:[%s1030_s3 + $0x198] sm:$0xff] %v289_v7 }
  0x3d   :  { %362 = vst [vmem:[%s1030_s3 + $0x1a0] sm:$0xff] %v290_v12 }
  0x3e   :  { %363 = vst [vmem:[%s1030_s3 + $0x1a8] sm:$0xff] %v291_v15 }
  0x3f   :  { %364 = vst [vmem:[%s1030_s3 + $0x1b0] sm:$0xff] %v292_v18 }
  0x40   :  { %365 = vst [vmem:[%s1030_s3 + $0x1b8] sm:$0xff] %v293_v21 }
  0x41   :  { %366 = vst [vmem:[%s1030_s3 + $0x1c0] sm:$0xff] %v294_v23 }
  0x42   :  { %367 = vst [vmem:[%s1030_s3 + $0x1c8] sm:$0xff] %v295_v25 }
  0x43   :  { %368 = vst [vmem:[%s1030_s3 + $0x1d0] sm:$0xff] %v296_v26 }
  0x44   :  { %369 = vst [vmem:[%s1030_s3 + $0x1d8] sm:$0xff] %v297_v28 }
  0x45   :  { %370 = vst [vmem:[%s1030_s3 + $0x1e0] sm:$0xff] %v298_v29 }
  0x46   :  { %371 = vst [vmem:[%s1030_s3 + $0x1e8] sm:$0xff] %v299_v30 }
  0x47   :  { %372 = vst [vmem:[%s1030_s3 + $0x1f0] sm:$0xff] %v300_v2 }
  0x48   :  { %373 = vst [vmem:[%s1030_s3 + $0x1f8] sm:$0xff] %v301_v31 }
  0x49   :  { %374 = vst [vmem:[%s1030_s3 + $0x200] sm:$0xff] %v302_v32 }
  0x4a   :  { %375 = vst [vmem:[%s1030_s3 + $0x208] sm:$0xff] %v303_v33 }
  0x4b   :  { %376 = vst [vmem:[%s1030_s3 + $0x210] sm:$0xff] %v304_v34 }
  0x4c   :  { %377 = vst [vmem:[%s1030_s3 + $0x218] sm:$0xff] %v305_v35 }
  0x4d   :  { %378 = vst [vmem:[%s1030_s3 + $0x220] sm:$0xff] %v306_v36 }
  0x4e   :  { %379 = vst [vmem:[%s1030_s3 + $0x228] sm:$0xff] %v307_v37 }
  0x4f   :  { %380 = vst [vmem:[%s1030_s3 + $0x230] sm:$0xff] %v308_v38 }
  0x50   :  { %381 = vst [vmem:[%s1030_s3 + $0x238] sm:$0xff] %v309_v39 }

// kernel: conv_bn_relu.2
= control target key start
LH: loop header
LB: loop body
LE: loop exit
PB: predicated region body
PF: predicated region fallthrough
CT: control target
= control target key end

     0   :  { %s2221_s18 = smov 0   ;;  %s2223_s19 = smov 0   ;;  %s2757_s0 = inlined_call_operand.vmem [shape: f32[2,1,324,12], index: 0, kind: input, shape index: {}]   ;;  %s2758_s1 = inlined_call_operand.vmem [shape: f32[3,12,128], index: 1, kind: input, shape index: {}]   ;;  %s2759_s2 = inlined_call_operand.vmem [shape: f32[1,288,1], index: 2, kind: input, shape index: {}]   ;;  %s2760_s3 = inlined_call_operand.vmem [shape: f32[2,288,128], index: 3, kind: output, shape index: {0}]   ;;  %s2761_s4 = inlined_call_operand.vmem [shape: f32[2,8,128], index: 4, kind: output, shape index: {1}]   ;;  %s2762_s5 = inlined_call_operand.vmem [shape: f32[2,8,128], index: 5, kind: output, shape index: {2}]  }
   0x1   :  { %s2225_s20 = smov 0  }
   0x2 LB: > { %s28_s21 = sadd.s32 1, %s2184_s19  ;;  %p2007_p0 = scmp.ge.s32.totalorder %s2188_s20, 1  ;;  %s2188_s20 = sphi %s2225_s20, %s16_s20   ;;  %s2184_s19 = sphi %s2223_s19, %s2764_s19   ;;  %s2180_s18 = sphi %s2221_s18, %s2763_s18  }
   0x3   : > { %p30_p1 = scmp.ge.s32.totalorder %s28_s21, 2  ;;  %p222_p2 = scmp.lt.s32.totalorder %s2188_s20, 3 }
   0x5   : > { %s2766_s21 = smov (%p30_p1, %s28_s21), 0  ;;  %p223_p3 = pnand %p2007_p0, %p222_p2 }
   0x6   : > { %p271_p4 = scmp.lt.s32.totalorder (!%p223_p3), %s2180_s18, 1 }
   0x7   : > { %226 = sbr.rel (%p223_p3) target bundleno = 399 (0x18f), region = 32 }
   0xc   : > { %v346_v0 = vld [vmem:[%s2758_s1 + $0x8] sm:$0xf]  ;;  %vm456_vm0 = vcmask 1043456   ;;  %v345_v2 = vld [vmem:[%s2758_s1] sm:$0xff]  ;;  %v2050_v4 = vld [vmem:[%s2758_s1 + $0x18] sm:$0xf] }
   0xd   : > { %v2089_v1 = vld [vmem:[%s2758_s1 + $0x28] sm:$0xf]  ;;  %2129 = vmatpush.msk.msra.mxu3 %vm456_vm0, %v346_v0  ;;  %v2088_v3 = vld [vmem:[%s2758_s1 + $0x20] sm:$0xff]  ;;  %v2049_v5 = vld [vmem:[%s2758_s1 + $0x10] sm:$0xff]  ;;  %2012 = vmatpush.msk.msra.mxu0 %vm456_vm0, %v346_v0  ;;  %s2768_s18 = smov (!%p271_p4, %s2180_s18), 1  ;;  %v2190_v7 = vmov 0  }
   0xe   : > { %2090 = vmatpush.msk.msra.mxu2 %vm456_vm0, %v2089_v1  ;;  %2051 = vmatpush.msk.msra.mxu1 %vm456_vm0, %v2050_v4  ;;  %v1459_v6 = vld [vmem:[%s2759_s2] sm:$0xff]  ;;  %s2135_s11 = smul.u32 328, %s2768_s18  ;;  %vm347_vm1 = vcmask 97280   ;;  %v1460_v12 = vld [vmem:[%s2759_s2 + $0x8] sm:$0xff]  ;;  %v1461_v15 = vld [vmem:[%s2759_s2 + $0x10] sm:$0xff] }
   0xf   : > { %2130 = vmatpush.msra.mxu3 %v345_v2  ;;  %475 = vmatpush.msra.mxu0 %v345_v2  ;;  %v1462_v18 = vld [vmem:[%s2759_s2 + $0x18] sm:$0xff]  ;;  %v1465_v31 = vld [vmem:[%s2759_s2 + $0x30] sm:$0xff]  ;;  %v1463_v36 = vld [vmem:[%s2759_s2 + $0x20] sm:$0xff]  ;;  %s2136_s23 = smul.u32 288, %s2768_s18 }
  0x10   : > { %1169 = vmatpush.msra.mxu2 %v2088_v3  ;;  %786 = vmatpush.msra.mxu1 %v2049_v5  ;;  %s2271_s14 = scalar_lea.vmem %s2757_s0, %s2135_s11  ;;  %v1466_v37 = vld [vmem:[%s2759_s2 + $0x38] sm:$0xff]  ;;  %v1464_v42 = vld [vmem:[%s2759_s2 + $0x28] sm:$0xff]  ;;  %v1469_v48 = vld [vmem:[%s2759_s2 + $0x50] sm:$0xff] }
  0x11   : > { %2163 = vset.pattern.permute.xlu0 %v2190_v7  ;;  %2131 = vmatpush.msk.msrb.mxu3 %vm456_vm0, %v2050_v4  ;;  %v336_v8 = vld [vmem:[%s2271_s14 + $0xd8] sm:$0xff]  ;;  %v1004_v9 = vld [vmem:[%s2271_s14 + $0x24] sm:$0xff]  ;;  %v1005_v14 = vld [vmem:[%s2271_s14 + $0x2c] sm:$0xff]  ;;  %s2512_s26 = scalar_lea.vmem %s2760_s3, %s2136_s23 }
  0x12   : > { %1497 = vperm.xlu0 %2163, %v1459_v6   ;;  %2164 = vset.pattern.permute.xlu1 %v2190_v7  ;;  %v309_v10 = vld [vmem:[%s2271_s14] sm:$0xff]  ;;  %v621_v11 = vld [vmem:[%s2271_s14 + $0x12] sm:$0xff]  ;;  %v310_v16 = vld [vmem:[%s2271_s14 + $0x8] sm:$0xff] }
  0x13   : > { %2132 = vmatpush.msrb.mxu3 %v2049_v5  ;;  %2165 = vset.pattern.permute.xlu2 %v2190_v7  ;;  %v337_v13 = vld [vmem:[%s2271_s14 + $0xe0] sm:$0xff]  ;;  %v338_v19 = vld [vmem:[%s2271_s14 + $0xe8] sm:$0xff]  ;;  %v1006_v20 = vld [vmem:[%s2271_s14 + $0x34] sm:$0xff] }
  0x14   : > { %2040 = vmatmul.msk.f32.vlgmr.msra.gmra.mxu3 %vm347_vm1, %v336_v8  ;;  %2091 = vmatmul.msk.f32.vlgmr.msra.gmra.mxu2 %vm347_vm1, %v1004_v9  ;;  %v622_v17 = vld [vmem:[%s2271_s14 + $0x1a] sm:$0xff]  ;;  %v311_v21 = vld [vmem:[%s2271_s14 + $0x10] sm:$0xff]  ;;  %v623_v22 = vld [vmem:[%s2271_s14 + $0x22] sm:$0xff] }
  0x15   : > { %2013 = vmatmul.msk.f32.vlgmr.msra.gmra.mxu0 %vm347_vm1, %v309_v10  ;;  %2052 = vmatmul.msk.f32.vlgmr.msra.gmra.mxu1 %vm347_vm1, %v621_v11  ;;  %v339_v23 = vld [vmem:[%s2271_s14 + $0xf0] sm:$0xff]  ;;  %v1007_v24 = vld [vmem:[%s2271_s14 + $0x3c] sm:$0xff]  ;;  %v1008_v28 = vld [vmem:[%s2271_s14 + $0x44] sm:$0xff] }
  0x16   : > { %2133 = vmatpush.msk.msra.mxu3 %vm456_vm0, %v2089_v1  ;;  %1507 = vperm.xlu1 %2164, %v1461_v15   ;;  %v312_v25 = vld [vmem:[%s2271_s14 + $0x18] sm:$0xff]  ;;  %v624_v26 = vld [vmem:[%s2271_s14 + $0x2a] sm:$0xff]  ;;  %v313_v29 = vld [vmem:[%s2271_s14 + $0x20] sm:$0xff] }
  0x17   : > { %v340_v27 = vld [vmem:[%s2271_s14 + $0xf8] sm:$0xff]  ;;  %v341_v32 = vld [vmem:[%s2271_s14 + $0x100] sm:$0xff]  ;;  %v1009_v33 = vld [vmem:[%s2271_s14 + $0x4c] sm:$0xff]  ;;  %1517 = vperm.xlu2 %2165, %v1463_v36  }
  0x18   : > { %2134 = vmatpush.msra.mxu3 %v2088_v3  ;;  %v625_v30 = vld [vmem:[%s2271_s14 + $0x32] sm:$0xff]  ;;  %v314_v34 = vld [vmem:[%s2271_s14 + $0x28] sm:$0xff]  ;;  %v626_v35 = vld [vmem:[%s2271_s14 + $0x3a] sm:$0xff] }
  0x19   : > { %v342_v38 = vld [vmem:[%s2271_s14 + $0x108] sm:$0xff]  ;;  %v1010_v39 = vld [vmem:[%s2271_s14 + $0x54] sm:$0xff]  ;;  %v1011_v44 = vld [vmem:[%s2271_s14 + $0x5c] sm:$0xff] }
  0x1a   : > { %1502 = vperm.xlu0 %2163, %v1460_v12   ;;  %v315_v40 = vld [vmem:[%s2271_s14 + $0x30] sm:$0xff]  ;;  %v627_v41 = vld [vmem:[%s2271_s14 + $0x42] sm:$0xff]  ;;  %v316_v45 = vld [vmem:[%s2271_s14 + $0x38] sm:$0xff] }
  0x1b   : > { %v343_v43 = vld [vmem:[%s2271_s14 + $0x110] sm:$0xff]  ;;  %v1468_v47 = vld [vmem:[%s2759_s2 + $0x48] sm:$0xff]  ;;  %v344_v49 = vld [vmem:[%s2271_s14 + $0x118] sm:$0xff] }
  0x1c   : > { %2041 = vmatmul.msk.f32.gmra.mxu3 %vm347_vm1, %v337_v13  ;;  %2092 = vmatmul.msk.f32.gmra.mxu2 %vm347_vm1, %v1005_v14  ;;  %v628_v46 = vld [vmem:[%s2271_s14 + $0x4a] sm:$0xff]  ;;  %v317_v51 = vld [vmem:[%s2271_s14 + $0x40] sm:$0xff]  ;;  %v629_v52 = vld [vmem:[%s2271_s14 + $0x52] sm:$0xff] }
  0x1d   : > { %2014 = vmatmul.msk.f32.gmra.mxu0 %vm347_vm1, %v310_v16  ;;  %2053 = vmatmul.msk.f32.gmra.mxu1 %vm347_vm1, %v622_v17  ;;  %v1012_v50 = vld [vmem:[%s2271_s14 + $0x64] sm:$0xff]  ;;  %v1013_v56 = vld [vmem:[%s2271_s14 + $0x6c] sm:$0xff]  ;;  %v630_v58 = vld [vmem:[%s2271_s14 + $0x5a] sm:$0xff] }
  0x1e   : > { %1512 = vperm.xlu1 %2164, %v1462_v18   ;;  %v1471_v53 = vld [vmem:[%s2759_s2 + $0x60] sm:$0xff]  ;;  %v1472_v54 = vld [vmem:[%s2759_s2 + $0x68] sm:$0xff]  ;;  %v1474_v59 = vld [vmem:[%s2759_s2 + $0x78] sm:$0xff] }
  0x1f   : > { %1522 = vperm.xlu2 %2165, %v1464_v42   ;;  %v648_v55 = vld [vmem:[%s2271_s14 + $0xea] sm:$0xff]  ;;  %v1467_v60 = vld [vmem:[%s2759_s2 + $0x40] sm:$0xff]  ;;  %v649_v62 = vld [vmem:[%s2271_s14 + $0xf2] sm:$0xff] }
  0x20   : > { %v318_v57 = vld [vmem:[%s2271_s14 + $0x48] sm:$0xff]  ;;  %v1475_v61 = vld [vmem:[%s2759_s2 + $0x80] sm:$0xff]  ;;  %v1014_v63 = vld [vmem:[%s2271_s14 + $0x74] sm:$0xff] }
  0x21   : > { %v319_v0 = vld [vmem:[%s2271_s14 + $0x50] sm:$0xff]  ;;  %v631_v1 = vld [vmem:[%s2271_s14 + $0x62] sm:$0xff]  ;;  %v1478_v3 = vld [vmem:[%s2759_s2 + $0x98] sm:$0xff] }
  0x22   : > { %1527 = vperm.xlu0 %2163, %v1465_v31   ;;  %v1477_v2 = vld [vmem:[%s2759_s2 + $0x90] sm:$0xff]  ;;  %v1470_v4 = vld [vmem:[%s2759_s2 + $0x58] sm:$0xff]  ;;  %v1480_v9 = vld [vmem:[%s2759_s2 + $0xa8] sm:$0xff] }
  0x23   : > { %v650_v5 = vld [vmem:[%s2271_s14 + $0xfa] sm:$0xff]  ;;  %v632_v8 = vld [vmem:[%s2271_s14 + $0x6a] sm:$0xff]  ;;  %v651_v12 = vld [vmem:[%s2271_s14 + $0x102] sm:$0xff] }
  0x24   : > { %2042 = vmatmul.msk.f32.gmra.mxu3 %vm347_vm1, %v338_v19  ;;  %2093 = vmatmul.msk.f32.gmra.mxu2 %vm347_vm1, %v1006_v20  ;;  %v1015_v6 = vld [vmem:[%s2271_s14 + $0x7c] sm:$0xff]  ;;  %v1481_v10 = vld [vmem:[%s2759_s2 + $0xb0] sm:$0xff]  ;;  %v1016_v13 = vld [vmem:[%s2271_s14 + $0x84] sm:$0xff] }
  0x25   : > { %2015 = vmatmul.msk.f32.gmra.mxu0 %vm347_vm1, %v311_v21  ;;  %2054 = vmatmul.msk.f32.gmra.mxu1 %vm347_vm1, %v623_v22  ;;  %v320_v7 = vld [vmem:[%s2271_s14 + $0x58] sm:$0xff]  ;;  %v1473_v11 = vld [vmem:[%s2759_s2 + $0x70] sm:$0xff]  ;;  %v321_v14 = vld [vmem:[%s2271_s14 + $0x60] sm:$0xff] }
  0x26   : > { %1532 = vperm.xlu1 %2164, %v1466_v37   ;;  %v633_v15 = vld [vmem:[%s2271_s14 + $0x72] sm:$0xff]  ;;  %v1483_v16 = vld [vmem:[%s2759_s2 + $0xc0] sm:$0xff]  ;;  %v1484_v17 = vld [vmem:[%s2759_s2 + $0xc8] sm:$0xff] }
  0x27   : > { %1537 = vperm.xlu2 %2165, %v1467_v60   ;;  %v1476_v18 = vld [vmem:[%s2759_s2 + $0x88] sm:$0xff]  ;;  %v634_v22 = vld [vmem:[%s2271_s14 + $0x7a] sm:$0xff] }
  0x28   : > { %v652_v19 = vld [vmem:[%s2271_s14 + $0x10a] sm:$0xff]  ;;  %v1490_v31 = vld [vmem:[%s2759_s2 + $0xf8] sm:$0xff] }
  0x29   : > { %v1017_v20 = vld [vmem:[%s2271_s14 + $0x8c] sm:$0xff] }
  0x2a   : > { %1542 = vperm.xlu0 %2163, %v1468_v47   ;;  %v322_v21 = vld [vmem:[%s2271_s14 + $0x68] sm:$0xff] }
  0x2b   : > { %v636_v36 = vld [vmem:[%s2271_s14 + $0x8a] sm:$0xff] }
  0x2c   : > { %2043 = vmatmul.msk.f32.gmra.mxu3 %vm347_vm1, %v339_v23  ;;  %2094 = vmatmul.msk.f32.gmra.mxu2 %vm347_vm1, %v1007_v24  ;;  %v1486_v23 = vld [vmem:[%s2759_s2 + $0xd8] sm:$0xff]  ;;  %v1487_v24 = vld [vmem:[%s2759_s2 + $0xe0] sm:$0xff]  ;;  %v1492_v37 = vld [vmem:[%s2759_s2 + $0x108] sm:$0xff] }
  0x2d   : > { %2016 = vmatmul.msk.f32.gmra.mxu0 %vm347_vm1, %v312_v25  ;;  %2055 = vmatmul.msk.f32.gmra.mxu1 %vm347_vm1, %v624_v26  ;;  %v1479_v25 = vld [vmem:[%s2759_s2 + $0xa0] sm:$0xff]  ;;  %v653_v26 = vld [vmem:[%s2271_s14 + $0x112] sm:$0xff] }
  0x2e   : > { %1547 = vperm.xlu1 %2164, %v1469_v48  }
  0x2f   : > { %1552 = vperm.xlu2 %2165, %v1470_v4  }
  0x32   : > { %1557 = vperm.xlu0 %2163, %v1471_v53   ;;  %v1021_v53 = vld [vmem:[%s2271_s14 + $0xac] sm:$0xff] }
  0x34   : > { %2044 = vmatmul.msk.f32.gmra.mxu3 %vm347_vm1, %v340_v27  ;;  %2095 = vmatmul.msk.f32.gmra.mxu2 %vm347_vm1, %v1008_v28  ;;  %v1018_v27 = vld [vmem:[%s2271_s14 + $0x94] sm:$0xff] }
  0x35   : > { %2017 = vmatmul.msk.f32.gmra.mxu0 %vm347_vm1, %v313_v29  ;;  %2056 = vmatmul.msk.f32.gmra.mxu1 %vm347_vm1, %v625_v30  ;;  %v323_v28 = vld [vmem:[%s2271_s14 + $0x70] sm:$0xff]  ;;  %v635_v29 = vld [vmem:[%s2271_s14 + $0x82] sm:$0xff] }
  0x36   : > { %1562 = vperm.xlu1 %2164, %v1472_v54   ;;  %v1489_v30 = vld [vmem:[%s2759_s2 + $0xf0] sm:$0xff] }
  0x37   : > { %1567 = vperm.xlu2 %2165, %v1473_v11  }
  0x3a   : > { %1572 = vperm.xlu0 %2163, %v1474_v59  }
  0x3c   : > { %2045 = vmatmul.msk.f32.gmra.mxu3 %vm347_vm1, %v341_v32  ;;  %2096 = vmatmul.msk.f32.gmra.mxu2 %vm347_vm1, %v1009_v33  ;;  %v1482_v32 = vld [vmem:[%s2759_s2 + $0xb8] sm:$0xff] }
  0x3d   : > { %2018 = vmatmul.msk.f32.gmra.mxu0 %vm347_vm1, %v314_v34  ;;  %2057 = vmatmul.msk.f32.gmra.mxu1 %vm347_vm1, %v626_v35  ;;  %v654_v33 = vld [vmem:[%s2271_s14 + $0x11a] sm:$0xff] }
  0x3e   : > { %1577 = vperm.xlu1 %2164, %v1475_v61   ;;  %v1019_v34 = vld [vmem:[%s2271_s14 + $0x9c] sm:$0xff] }
  0x3f   : > { %1582 = vperm.xlu2 %2165, %v1476_v18   ;;  %v324_v35 = vld [vmem:[%s2271_s14 + $0x78] sm:$0xff] }
  0x40   : > { %v1023_v18 = vld [vmem:[%s2271_s14 + $0xbc] sm:$0xff] }
  0x42   : > { %1587 = vperm.xlu0 %2163, %v1477_v2   ;;  %v1031_v2 = vld [vmem:[%s2271_s14 + $0xfc] sm:$0xff] }
  0x44   : > { %2046 = vmatmul.msk.f32.gmra.mxu3 %vm347_vm1, %v342_v38  ;;  %2097 = vmatmul.msk.f32.gmra.mxu2 %vm347_vm1, %v1010_v39  ;;  %v1493_v38 = vld [vmem:[%s2759_s2 + $0x110] sm:$0xff] }
  0x45   : > { %2019 = vmatmul.msk.f32.gmra.mxu0 %vm347_vm1, %v315_v40  ;;  %2058 = vmatmul.msk.f32.gmra.mxu1 %vm347_vm1, %v627_v41  ;;  %v1485_v39 = vld [vmem:[%s2759_s2 + $0xd0] sm:$0xff]  ;;  %v655_v40 = vld [vmem:[%s2271_s14 + $0x122] sm:$0xff] }
  0x46   : > { %1592 = vperm.xlu1 %2164, %v1478_v3   ;;  %v1020_v41 = vld [vmem:[%s2271_s14 + $0xa4] sm:$0xff] }
  0x47   : > { %1597 = vperm.xlu2 %2165, %v1479_v25  }
  0x4a   : > { %1602 = vperm.xlu0 %2163, %v1480_v9  }
  0x4c   : > { %2047 = vmatmul.msk.f32.gmra.mxu3 %vm347_vm1, %v343_v43  ;;  %2098 = vmatmul.msk.f32.gmra.mxu2 %vm347_vm1, %v1011_v44  ;;  %v325_v44 = vld [vmem:[%s2271_s14 + $0x80] sm:$0xff] }
  0x4d   : > { %2020 = vmatmul.msk.f32.gmra.mxu0 %vm347_vm1, %v316_v45  ;;  %2059 = vmatmul.msk.f32.gmra.mxu1 %vm347_vm1, %v628_v46  ;;  %v637_v45 = vld [vmem:[%s2271_s14 + $0x92] sm:$0xff] }
  0x4e   : > { %1607 = vperm.xlu1 %2164, %v1481_v10  }
  0x4f   : > { %1612 = vperm.xlu2 %2165, %v1482_v32  }
  0x52   : > { %1617 = vperm.xlu0 %2163, %v1483_v16  }
  0x54   : > { %2048 = vmatmul.msk.f32.gmra.mxu3 %vm347_vm1, %v344_v49  ;;  %2099 = vmatmul.msk.f32.gmra.mxu2 %vm347_vm1, %v1012_v50 }
  0x55   : > { %2021 = vmatmul.msk.f32.gmra.mxu0 %vm347_vm1, %v317_v51  ;;  %2060 = vmatmul.msk.f32.gmra.mxu1 %vm347_vm1, %v629_v52  ;;  %v1488_v51 = vld [vmem:[%s2759_s2 + $0xe8] sm:$0xff] }
  0x56   : > { %1622 = vperm.xlu1 %2164, %v1484_v17   ;;  %v656_v52 = vld [vmem:[%s2271_s14 + $0x12a] sm:$0xff]  ;;  %v1494_v17 = vld [vmem:[%s2759_s2 + $0x118] sm:$0xff] }
  0x57   : > { %1627 = vperm.xlu2 %2165, %v1485_v39   ;;  %v641_v39 = vld [vmem:[%s2271_s14 + $0xb2] sm:$0xff] }
  0x5a   : > { %1632 = vperm.xlu0 %2163, %v1486_v23   ;;  %v328_v23 = vld [vmem:[%s2271_s14 + $0x98] sm:$0xff] }
  0x5c   : > { %2079 = vmatmul.msk.f32.vlgmr.msrb.gmra.mxu3 %vm347_vm1, %v648_v55  ;;  %2100 = vmatmul.msk.f32.gmra.mxu2 %vm347_vm1, %v1013_v56  ;;  %v326_v56 = vld [vmem:[%s2271_s14 + $0x88] sm:$0xff] }
  0x5d   : > { %2022 = vmatmul.msk.f32.gmra.mxu0 %vm347_vm1, %v318_v57  ;;  %2061 = vmatmul.msk.f32.gmra.mxu1 %vm347_vm1, %v630_v58  ;;  %v638_v57 = vld [vmem:[%s2271_s14 + $0x9a] sm:$0xff] }
  0x5e   : > { %1637 = vperm.xlu1 %2164, %v1487_v24   ;;  %v640_v24 = vld [vmem:[%s2271_s14 + $0xaa] sm:$0xff] }
  0x5f   : > { %1642 = vperm.xlu2 %2165, %v1488_v51  }
  0x62   : > { %1647 = vperm.xlu0 %2163, %v1489_v30  }
  0x64   : > { %2080 = vmatmul.msk.f32.gmra.mxu3 %vm347_vm1, %v649_v62  ;;  %2101 = vmatmul.msk.f32.gmra.mxu2 %vm347_vm1, %v1014_v63 }
  0x65   : > { %2023 = vmatmul.msk.f32.gmra.mxu0 %vm347_vm1, %v319_v0  ;;  %2062 = vmatmul.msk.f32.gmra.mxu1 %vm347_vm1, %v631_v1  ;;  %v1491_v0 = vld [vmem:[%s2759_s2 + $0x100] sm:$0xff]  ;;  %v1022_v1 = vld [vmem:[%s2271_s14 + $0xb4] sm:$0xff] }
  0x66   : > { %1652 = vperm.xlu1 %2164, %v1490_v31  }
  0x67   : > { %1657 = vperm.xlu2 %2165, %v1491_v0  }
  0x6a   : > { %1662 = vperm.xlu0 %2163, %v1492_v37  }
  0x6c   : > { %2081 = vmatmul.msk.f32.gmra.mxu3 %vm347_vm1, %v650_v5  ;;  %2102 = vmatmul.msk.f32.gmra.mxu2 %vm347_vm1, %v1015_v6  ;;  %v327_v6 = vld [vmem:[%s2271_s14 + $0x90] sm:$0xff] }
  0x6d   : > { %2024 = vmatmul.msk.f32.gmra.mxu0 %vm347_vm1, %v320_v7  ;;  %2063 = vmatmul.msk.f32.gmra.mxu1 %vm347_vm1, %v632_v8  ;;  %v639_v7 = vld [vmem:[%s2271_s14 + $0xa2] sm:$0xff] }
  0x6e   : > { %1667 = vperm.xlu1 %2164, %v1493_v38   ;;  %v329_v38 = vld [vmem:[%s2271_s14 + $0xa0] sm:$0xff] }
  0x6f   : > { %1672 = vperm.xlu2 %2165, %v1494_v17   ;;  %v1027_v17 = vld [vmem:[%s2271_s14 + $0xdc] sm:$0xff] }
  0x74   : > { %2082 = vmatmul.msk.f32.gmra.mxu3 %vm347_vm1, %v651_v12  ;;  %2103 = vmatmul.msk.f32.gmra.mxu2 %vm347_vm1, %v1016_v13 }
  0x75   : > { %2025 = vmatmul.msk.f32.gmra.mxu0 %vm347_vm1, %v321_v14  ;;  %2064 = vmatmul.msk.f32.gmra.mxu1 %vm347_vm1, %v633_v15 }
  0x7c   : > { %2083 = vmatmul.msk.f32.gmra.mxu3 %vm347_vm1, %v652_v19  ;;  %2104 = vmatmul.msk.f32.gmra.mxu2 %vm347_vm1, %v1017_v20  ;;  %v1032_v19 = vld [vmem:[%s2271_s14 + $0x104] sm:$0xff] }
  0x7d   : > { %2026 = vmatmul.msk.f32.gmra.mxu0 %vm347_vm1, %v322_v21  ;;  %2065 = vmatmul.msk.f32.gmra.mxu1 %vm347_vm1, %v634_v22 }
  0x84   : > { %2084 = vmatmul.msk.f32.gmra.mxu3 %vm347_vm1, %v653_v26  ;;  %2105 = vmatmul.msk.f32.gmra.mxu2 %vm347_vm1, %v1018_v27  ;;  %v1498_v47 = vpop.permute.xlu0 %1497 }
  0x85   : > { %2027 = vmatmul.msk.f32.gmra.mxu0 %vm347_vm1, %v323_v28  ;;  %2066 = vmatmul.msk.f32.gmra.mxu1 %vm347_vm1, %v635_v29 }
  0x88   : > { %v1508_v12 = vpop.permute.xlu1 %1507 }
  0x8c   : > { %2085 = vmatmul.msk.f32.gmra.mxu3 %vm347_vm1, %v654_v33  ;;  %2106 = vmatmul.msk.f32.gmra.mxu2 %vm347_vm1, %v1019_v34  ;;  %v1503_v59 = vpop.permute.xlu0 %1502  ;;  %v1024_v33 = vld [vmem:[%s2271_s14 + $0xc4] sm:$0xff]  ;;  %v1033_v34 = vld [vmem:[%s2271_s14 + $0x10c] sm:$0xff] }
  0x8d   : > { %2028 = vmatmul.msk.f32.gmra.mxu0 %vm347_vm1, %v324_v35  ;;  %2067 = vmatmul.msk.f32.gmra.mxu1 %vm347_vm1, %v636_v36 }
  0x90   : > { %v1513_v29 = vpop.permute.xlu1 %1512 }
  0x92   : > { %v477_v42 = vpop.f32.mrf.mxu0  ;;  %v788_v43 = vpop.f32.mrf.mxu1 }
  0x93   : > { %v932_v46 = vadd.f32 %v788_v43, %v477_v42  ;;  %v1518_v43 = vpop.permute.xlu2 %1517 }
  0x94   : > { %2086 = vmatmul.msk.f32.gmra.mxu3 %vm347_vm1, %v655_v40  ;;  %2107 = vmatmul.msk.f32.gmra.mxu2 %vm347_vm1, %v1020_v41 }
  0x95   : > { %2029 = vmatmul.msk.f32.gmra.mxu0 %vm347_vm1, %v325_v44  ;;  %2068 = vmatmul.msk.f32.gmra.mxu1 %vm347_vm1, %v637_v45 }
  0x97   : > { %v2507_v48 = vpop.f32.mrf.mxu3  ;;  %v1171_v49 = vpop.f32.mrf.mxu2 }
  0x98   : > { %v1315_v50 = vadd.f32 %v1171_v49, %v932_v46  ;;  %v1025_v49 = vld [vmem:[%s2271_s14 + $0xcc] sm:$0xff] }
  0x9a   : > { %1423 = vst [vmem:[%s2512_s26] sm:$0xff] %v1315_v50  ;;  %v480_v54 = vpop.f32.mrf.mxu0  ;;  %v791_v55 = vpop.f32.mrf.mxu1  ;;  %v1675_v60 = vmul.f32 %v1498_v47, %v1315_v50  ;;  %v1034_v50 = vld [vmem:[%s2271_s14 + $0x114] sm:$0xff] }
  0x9b   : > { %v933_v58 = vadd.f32 %v791_v55, %v480_v54  ;;  %v330_v54 = vld [vmem:[%s2271_s14 + $0xa8] sm:$0xff]  ;;  %v642_v55 = vld [vmem:[%s2271_s14 + $0xba] sm:$0xff] }
  0x9c   : > { %2087 = vmatmul.msk.f32.gmra.mxu3 %vm347_vm1, %v656_v52  ;;  %2108 = vmatmul.msk.f32.gmra.mxu2 %vm347_vm1, %v1021_v53  ;;  %v1756_v8 = vmul.f32 %v1675_v60, %v1675_v60 }
  0x9d   : > { %2030 = vmatmul.msk.f32.gmra.mxu0 %vm347_vm1, %v326_v56  ;;  %2069 = vmatmul.msk.f32.gmra.mxu1 %vm347_vm1, %v638_v57 }
  0x9f   : > { %v2526_v61 = vpop.f32.mrf.mxu3  ;;  %v1174_v62 = vpop.f32.mrf.mxu2 }
  0xa0   : > { %v1316_v63 = vadd.f32 %v1174_v62, %v933_v58 }
  0xa2   : > { %1424 = vst [vmem:[%s2512_s26 + $0x8] sm:$0xff] %v1316_v63  ;;  %v1676_v3 = vmul.f32 %v1503_v59, %v1316_v63  ;;  %v483_v4 = vpop.f32.mrf.mxu0  ;;  %v794_v5 = vpop.f32.mrf.mxu1 }
  0xa3   : > { %v934_v11 = vadd.f32 %v794_v5, %v483_v4 }
  0xa4   : > { %v1712_v9 = vadd.f32 %v1676_v3, %v1675_v60  ;;  %v1757_v10 = vmul.f32 %v1676_v3, %v1676_v3  ;;  %2109 = vmatmul.msk.f32.gmra.mxu2 %vm347_vm1, %v1022_v1  ;;  %2118 = vmatmul.msk.f32.vlgmr.msra.gmra.mxu3 %vm347_vm1, %v1031_v2  ;;  %v1523_v60 = vpop.permute.xlu2 %1522  ;;  %v1026_v1 = vld [vmem:[%s2271_s14 + $0xd4] sm:$0xff]  ;;  %v1035_v2 = vld [vmem:[%s2271_s14 + $0x11c] sm:$0xff] }
  0xa5   : > { %2031 = vmatmul.msk.f32.gmra.mxu0 %vm347_vm1, %v327_v6  ;;  %2070 = vmatmul.msk.f32.gmra.mxu1 %vm347_vm1, %v639_v7  ;;  %v331_v6 = vld [vmem:[%s2271_s14 + $0xb0] sm:$0xff]  ;;  %v643_v7 = vld [vmem:[%s2271_s14 + $0xc2] sm:$0xff] }
  0xa6   : > { %v1792_v13 = vadd.f32 %v1757_v10, %v1756_v8 }
  0xa7   : > { %v2540_v14 = vpop.f32.mrf.mxu3  ;;  %v1177_v15 = vpop.f32.mrf.mxu2 }
  0xa8   : > { %v1317_v16 = vadd.f32 %v1177_v15, %v934_v11 }
  0xaa   : > { %1425 = vst [vmem:[%s2512_s26 + $0x10] sm:$0xff] %v1317_v16  ;;  %v1677_v20 = vmul.f32 %v1508_v12, %v1317_v16  ;;  %v486_v21 = vpop.f32.mrf.mxu0  ;;  %v797_v22 = vpop.f32.mrf.mxu1 }
  0xab   : > { %v935_v27 = vadd.f32 %v797_v22, %v486_v21  ;;  %v1528_v12 = vpop.permute.xlu0 %1527  ;;  %v332_v22 = vld [vmem:[%s2271_s14 + $0xb8] sm:$0xff] }
  0xac   : > { %v1713_v25 = vadd.f32 %v1712_v9, %v1677_v20  ;;  %v1758_v26 = vmul.f32 %v1677_v20, %v1677_v20  ;;  %2110 = vmatmul.msk.f32.gmra.mxu2 %vm347_vm1, %v1023_v18  ;;  %2119 = vmatmul.msk.f32.gmra.mxu3 %vm347_vm1, %v1032_v19  ;;  %v1036_v18 = vld [vmem:[%s2271_s14 + $0x124] sm:$0xff] }
  0xad   : > { %2032 = vmatmul.msk.f32.gmra.mxu0 %vm347_vm1, %v328_v23  ;;  %2071 = vmatmul.msk.f32.gmra.mxu1 %vm347_vm1, %v640_v24  ;;  %v644_v23 = vld [vmem:[%s2271_s14 + $0xca] sm:$0xff] }
  0xae   : > { %v1793_v28 = vadd.f32 %v1792_v13, %v1758_v26 }
  0xaf   : > { %v2554_v30 = vpop.f32.mrf.mxu3  ;;  %v1180_v31 = vpop.f32.mrf.mxu2 }
  0xb0   : > { %v1318_v32 = vadd.f32 %v1180_v31, %v935_v27 }
  0xb2   : > { %1426 = vst [vmem:[%s2512_s26 + $0x18] sm:$0xff] %v1318_v32  ;;  %v1678_v35 = vmul.f32 %v1513_v29, %v1318_v32  ;;  %v489_v36 = vpop.f32.mrf.mxu0  ;;  %v800_v37 = vpop.f32.mrf.mxu1 }
  0xb3   : > { %v936_v42 = vadd.f32 %v800_v37, %v489_v36 }
  0xb4   : > { %v1714_v40 = vadd.f32 %v1713_v25, %v1678_v35  ;;  %v1759_v41 = vmul.f32 %v1678_v35, %v1678_v35  ;;  %2111 = vmatmul.msk.f32.gmra.mxu2 %vm347_vm1, %v1024_v33  ;;  %2120 = vmatmul.msk.f32.gmra.mxu3 %vm347_vm1, %v1033_v34  ;;  %v1028_v33 = vld [vmem:[%s2271_s14 + $0xe4] sm:$0xff]  ;;  %v1037_v34 = vld [vmem:[%s2271_s14 + $0x12c] sm:$0xff] }
  0xb5   : > { %2033 = vmatmul.msk.f32.gmra.mxu0 %vm347_vm1, %v329_v38  ;;  %2072 = vmatmul.msk.f32.gmra.mxu1 %vm347_vm1, %v641_v39  ;;  %v333_v38 = vld [vmem:[%s2271_s14 + $0xc0] sm:$0xff]  ;;  %v645_v39 = vld [vmem:[%s2271_s14 + $0xd2] sm:$0xff] }
  0xb6   : > { %v1794_v44 = vadd.f32 %v1793_v28, %v1759_v41  ;;  %v1533_v28 = vpop.permute.xlu1 %1532 }
  0xb7   : > { %v2565_v45 = vpop.f32.mrf.mxu3  ;;  %v1183_v46 = vpop.f32.mrf.mxu2 }
  0xb8   : > { %v1319_v47 = vadd.f32 %v1183_v46, %v936_v42 }
  0xba   : > { %1427 = vst [vmem:[%s2512_s26 + $0x20] sm:$0xff] %v1319_v47  ;;  %v1679_v51 = vmul.f32 %v1518_v43, %v1319_v47  ;;  %v492_v52 = vpop.f32.mrf.mxu0  ;;  %v803_v53 = vpop.f32.mrf.mxu1 }
  0xbb   : > { %v937_v58 = vadd.f32 %v803_v53, %v492_v52 }
  0xbc   : > { %v1715_v56 = vadd.f32 %v1714_v40, %v1679_v51  ;;  %v1760_v57 = vmul.f32 %v1679_v51, %v1679_v51  ;;  %2112 = vmatmul.msk.f32.gmra.mxu2 %vm347_vm1, %v1025_v49  ;;  %2121 = vmatmul.msk.f32.gmra.mxu3 %vm347_vm1, %v1034_v50  ;;  %v1029_v50 = vld [vmem:[%s2271_s14 + $0xec] sm:$0xff]  ;;  %v1038_v51 = vld [vmem:[%s2271_s14 + $0x134] sm:$0xff] }
  0xbd   : > { %2034 = vmatmul.msk.f32.gmra.mxu0 %vm347_vm1, %v330_v54  ;;  %2073 = vmatmul.msk.f32.gmra.mxu1 %vm347_vm1, %v642_v55  ;;  %v334_v55 = vld [vmem:[%s2271_s14 + $0xc8] sm:$0xff] }
  0xbe   : > { %v1795_v59 = vadd.f32 %v1794_v44, %v1760_v57  ;;  %v1538_v44 = vpop.permute.xlu2 %1537 }
  0xbf   : > { %v2576_v62 = vpop.f32.mrf.mxu3  ;;  %v1186_v63 = vpop.f32.mrf.mxu2 }
  0xc0   : > { %v1320_v0 = vadd.f32 %v1186_v63, %v937_v58 }
  0xc2   : > { %1428 = vst [vmem:[%s2512_s26 + $0x28] sm:$0xff] %v1320_v0  ;;  %v1680_v3 = vmul.f32 %v1523_v60, %v1320_v0  ;;  %v495_v4 = vpop.f32.mrf.mxu0  ;;  %v806_v5 = vpop.f32.mrf.mxu1 }
  0xc3   : > { %v938_v10 = vadd.f32 %v806_v5, %v495_v4  ;;  %v1039_v4 = vld [vmem:[%s2271_s14 + $0x13c] sm:$0xff] }
  0xc4   : > { %v1716_v8 = vadd.f32 %v1715_v56, %v1680_v3  ;;  %v1761_v9 = vmul.f32 %v1680_v3, %v1680_v3  ;;  %2113 = vmatmul.msk.f32.gmra.mxu2 %vm347_vm1, %v1026_v1  ;;  %2122 = vmatmul.msk.f32.gmra.mxu3 %vm347_vm1, %v1035_v2  ;;  %v646_v56 = vld [vmem:[%s2271_s14 + $0xda] sm:$0xff]  ;;  %v1543_v2 = vpop.permute.xlu0 %1542 }
  0xc5   : > { %2035 = vmatmul.msk.f32.gmra.mxu0 %vm347_vm1, %v331_v6  ;;  %2074 = vmatmul.msk.f32.gmra.mxu1 %vm347_vm1, %v643_v7  ;;  %v1030_v3 = vld [vmem:[%s2271_s14 + $0xf4] sm:$0xff] }
  0xc6   : > { %v1796_v11 = vadd.f32 %v1795_v59, %v1761_v9  ;;  %v647_v9 = vld [vmem:[%s2271_s14 + $0xe2] sm:$0xff] }
  0xc7   : > { %v2587_v13 = vpop.f32.mrf.mxu3  ;;  %v1189_v15 = vpop.f32.mrf.mxu2 }
  0xc8   : > { %v1321_v16 = vadd.f32 %v1189_v15, %v938_v10 }
  0xca   : > { %1429 = vst [vmem:[%s2512_s26 + $0x30] sm:$0xff] %v1321_v16  ;;  %v1681_v19 = vmul.f32 %v1528_v12, %v1321_v16  ;;  %v498_v20 = vpop.f32.mrf.mxu0  ;;  %v809_v21 = vpop.f32.mrf.mxu1 }
  0xcb   : > { %v939_v26 = vadd.f32 %v809_v21, %v498_v20 }
  0xcc   : > { %v1717_v24 = vadd.f32 %v1716_v8, %v1681_v19  ;;  %v1762_v25 = vmul.f32 %v1681_v19, %v1681_v19  ;;  %2114 = vmatmul.msk.f32.gmra.mxu2 %vm347_vm1, %v1027_v17  ;;  %2123 = vmatmul.msk.f32.gmra.mxu3 %vm347_vm1, %v1036_v18  ;;  %v335_v8 = vld [vmem:[%s2271_s14 + $0xd0] sm:$0xff]  ;;  %v1548_v19 = vpop.permute.xlu1 %1547  ;;  %s2010_s14 = sshll.u32 %s2768_s18, 3 }
  0xcd   : > { %2036 = vmatmul.msk.f32.gmra.mxu0 %vm347_vm1, %v332_v22  ;;  %2075 = vmatmul.msk.f32.gmra.mxu1 %vm347_vm1, %v644_v23  ;;  %s298_s10 = scalar_lea.vmem %s2761_s4, %s2010_s14  ;;  %s302_s13 = scalar_lea.vmem %s2762_s5, %s2010_s14 }
  0xce   : > { %v1797_v27 = vadd.f32 %v1796_v11, %v1762_v25 }
  0xcf   : > { %v2598_v29 = vpop.f32.mrf.mxu3  ;;  %v1192_v31 = vpop.f32.mrf.mxu2 }
  0xd0   : > { %v1322_v32 = vadd.f32 %v1192_v31, %v939_v26 }
  0xd2   : > { %1430 = vst [vmem:[%s2512_s26 + $0x38] sm:$0xff] %v1322_v32  ;;  %v1682_v35 = vmul.f32 %v1533_v28, %v1322_v32  ;;  %v501_v36 = vpop.f32.mrf.mxu0  ;;  %v812_v37 = vpop.f32.mrf.mxu1 }
  0xd3   : > { %v940_v42 = vadd.f32 %v812_v37, %v501_v36  ;;  %v1553_v32 = vpop.permute.xlu2 %1552 }
  0xd4   : > { %v1718_v40 = vadd.f32 %v1717_v24, %v1682_v35  ;;  %v1763_v41 = vmul.f32 %v1682_v35, %v1682_v35  ;;  %2115 = vmatmul.msk.f32.gmra.mxu2 %vm347_vm1, %v1028_v33  ;;  %2124 = vmatmul.msk.f32.gmra.mxu3 %vm347_vm1, %v1037_v34 }
  0xd5   : > { %2037 = vmatmul.msk.f32.gmra.mxu0 %vm347_vm1, %v333_v38  ;;  %2076 = vmatmul.msk.f32.gmra.mxu1 %vm347_vm1, %v645_v39 }
  0xd6   : > { %v1798_v43 = vadd.f32 %v1797_v27, %v1763_v41 }
  0xd7   : > { %v2609_v46 = vpop.f32.mrf.mxu3  ;;  %v1195_v47 = vpop.f32.mrf.mxu2 }
  0xd8   : > { %v1323_v49 = vadd.f32 %v1195_v47, %v940_v42 }
  0xda   : > { %1431 = vst [vmem:[%s2512_s26 + $0x40] sm:$0xff] %v1323_v49  ;;  %v1683_v52 = vmul.f32 %v1538_v44, %v1323_v49  ;;  %v504_v53 = vpop.f32.mrf.mxu0  ;;  %v815_v54 = vpop.f32.mrf.mxu1 }
  0xdb   : > { %v941_v59 = vadd.f32 %v815_v54, %v504_v53 }
  0xdc   : > { %v1719_v57 = vadd.f32 %v1718_v40, %v1683_v52  ;;  %v1764_v58 = vmul.f32 %v1683_v52, %v1683_v52  ;;  %2116 = vmatmul.msk.f32.gmra.mxu2 %vm347_vm1, %v1029_v50  ;;  %2125 = vmatmul.msk.f32.gmra.mxu3 %vm347_vm1, %v1038_v51 }
  0xdd   : > { %2038 = vmatmul.msk.f32.gmra.mxu0 %vm347_vm1, %v334_v55  ;;  %2077 = vmatmul.msk.f32.gmra.mxu1 %vm347_vm1, %v646_v56 }
  0xde   : > { %v1799_v60 = vadd.f32 %v1798_v43, %v1764_v58  ;;  %v1558_v43 = vpop.permute.xlu0 %1557 }
  0xdf   : > { %v2620_v63 = vpop.f32.mrf.mxu3  ;;  %v1198_v0 = vpop.f32.mrf.mxu2 }
  0xe0   : > { %v1324_v1 = vadd.f32 %v1198_v0, %v941_v59 }
  0xe2   : > { %1432 = vst [vmem:[%s2512_s26 + $0x48] sm:$0xff] %v1324_v1  ;;  %v1684_v5 = vmul.f32 %v1543_v2, %v1324_v1  ;;  %v507_v6 = vpop.f32.mrf.mxu0  ;;  %v818_v7 = vpop.f32.mrf.mxu1 }
  0xe3   : > { %v942_v12 = vadd.f32 %v818_v7, %v507_v6  ;;  %v1568_v7 = vpop.permute.xlu2 %1567 }
  0xe4   : > { %v1720_v10 = vadd.f32 %v1719_v57, %v1684_v5  ;;  %v1765_v11 = vmul.f32 %v1684_v5, %v1684_v5  ;;  %2117 = vmatmul.msk.f32.gmra.mxu2 %vm347_vm1, %v1030_v3  ;;  %2126 = vmatmul.msk.f32.gmra.mxu3 %vm347_vm1, %v1039_v4  ;;  %v1563_v57 = vpop.permute.xlu1 %1562 }
  0xe5   : > { %2039 = vmatmul.msk.f32.gmra.mxu0 %vm347_vm1, %v335_v8  ;;  %2078 = vmatmul.msk.f32.gmra.mxu1 %vm347_vm1, %v647_v9 }
  0xe6   : > { %v1800_v15 = vadd.f32 %v1799_v60, %v1765_v11 }
  0xe7   : > { %v2631_v16 = vpop.f32.mrf.mxu3  ;;  %v1201_v17 = vpop.f32.mrf.mxu2 }
  0xe8   : > { %v1325_v18 = vadd.f32 %v1201_v17, %v942_v12 }
  0xea   : > { %1433 = vst [vmem:[%s2512_s26 + $0x50] sm:$0xff] %v1325_v18  ;;  %v1685_v20 = vmul.f32 %v1548_v19, %v1325_v18  ;;  %v510_v21 = vpop.f32.mrf.mxu0  ;;  %v821_v22 = vpop.f32.mrf.mxu1 }
  0xeb   : > { %v943_v25 = vadd.f32 %v821_v22, %v510_v21  ;;  %v1573_v21 = vpop.permute.xlu0 %1572 }
  0xec   : > { %v1721_v23 = vadd.f32 %v1720_v10, %v1685_v20  ;;  %v1766_v24 = vmul.f32 %v1685_v20, %v1685_v20 }
  0xee   : > { %v1801_v26 = vadd.f32 %v1800_v15, %v1766_v24 }
  0xef   : > { %v2634_v27 = vpop.f32.mrf.mxu3  ;;  %v1204_v28 = vpop.f32.mrf.mxu2 }
  0xf0   : > { %v1326_v31 = vadd.f32 %v1204_v28, %v943_v25 }
  0xf2   : > { %1434 = vst [vmem:[%s2512_s26 + $0x58] sm:$0xff] %v1326_v31  ;;  %v1686_v33 = vmul.f32 %v1553_v32, %v1326_v31  ;;  %v513_v34 = vpop.f32.mrf.mxu0  ;;  %v824_v35 = vpop.f32.mrf.mxu1 }
  0xf3   : > { %v944_v38 = vadd.f32 %v824_v35, %v513_v34 }
  0xf4   : > { %v1722_v36 = vadd.f32 %v1721_v23, %v1686_v33  ;;  %v1767_v37 = vmul.f32 %v1686_v33, %v1686_v33 }
  0xf6   : > { %v1802_v39 = vadd.f32 %v1801_v26, %v1767_v37 }
  0xf7   : > { %v2637_v40 = vpop.f32.mrf.mxu3  ;;  %v1207_v41 = vpop.f32.mrf.mxu2 }
  0xf8   : > { %v1327_v42 = vadd.f32 %v1207_v41, %v944_v38 }
  0xfa   : > { %1435 = vst [vmem:[%s2512_s26 + $0x60] sm:$0xff] %v1327_v42  ;;  %v1687_v44 = vmul.f32 %v1558_v43, %v1327_v42  ;;  %v516_v47 = vpop.f32.mrf.mxu0  ;;  %v827_v49 = vpop.f32.mrf.mxu1 }
  0xfb   : > { %v945_v52 = vadd.f32 %v827_v49, %v516_v47  ;;  %v959_v47 = vadd.f32 %v2620_v63, %v2507_v48 }
  0xfc   : > { %v1723_v50 = vadd.f32 %v1722_v36, %v1687_v44  ;;  %v1768_v51 = vmul.f32 %v1687_v44, %v1687_v44 }
  0xfe   : > { %v1803_v53 = vadd.f32 %v1802_v39, %v1768_v51 }
  0xff   : > { %v2640_v54 = vpop.f32.mrf.mxu3  ;;  %v1210_v55 = vpop.f32.mrf.mxu2 }
 0x100   : > { %v1328_v56 = vadd.f32 %v1210_v55, %v945_v52 }
 0x102   : > { %1436 = vst [vmem:[%s2512_s26 + $0x68] sm:$0xff] %v1328_v56  ;;  %v1688_v58 = vmul.f32 %v1563_v57, %v1328_v56  ;;  %v519_v59 = vpop.f32.mrf.mxu0  ;;  %v830_v60 = vpop.f32.mrf.mxu1  ;;  %v960_v57 = vadd.f32 %v2631_v16, %v2526_v61 }
 0x103   : > { %v946_v2 = vadd.f32 %v830_v60, %v519_v59 }
 0x104   : > { %v1724_v0 = vadd.f32 %v1723_v50, %v1688_v58  ;;  %v1769_v1 = vmul.f32 %v1688_v58, %v1688_v58 }
 0x106   : > { %v1804_v3 = vadd.f32 %v1803_v53, %v1769_v1 }
 0x107   : > { %v2643_v4 = vpop.f32.mrf.mxu3  ;;  %v1213_v5 = vpop.f32.mrf.mxu2 }
 0x108   : > { %v1329_v6 = vadd.f32 %v1213_v5, %v946_v2  ;;  %v961_v2 = vadd.f32 %v2634_v27, %v2540_v14 }
 0x10a   : > { %1437 = vst [vmem:[%s2512_s26 + $0x70] sm:$0xff] %v1329_v6  ;;  %v1689_v8 = vmul.f32 %v1568_v7, %v1329_v6  ;;  %v522_v9 = vpop.f32.mrf.mxu0  ;;  %v833_v10 = vpop.f32.mrf.mxu1 }
 0x10b   : > { %v947_v15 = vadd.f32 %v833_v10, %v522_v9  ;;  %v1578_v6 = vpop.permute.xlu1 %1577  ;;  %v1583_v9 = vpop.permute.xlu2 %1582 }
 0x10c   : > { %v1725_v11 = vadd.f32 %v1724_v0, %v1689_v8  ;;  %v1770_v12 = vmul.f32 %v1689_v8, %v1689_v8 }
 0x10e   : > { %v1805_v17 = vadd.f32 %v1804_v3, %v1770_v12 }
 0x10f   : > { %v2646_v18 = vpop.f32.mrf.mxu3  ;;  %v1216_v19 = vpop.f32.mrf.mxu2 }
 0x110   : > { %v1330_v20 = vadd.f32 %v1216_v19, %v947_v15 }
 0x112   : > { %1438 = vst [vmem:[%s2512_s26 + $0x78] sm:$0xff] %v1330_v20  ;;  %v1690_v22 = vmul.f32 %v1573_v21, %v1330_v20  ;;  %v525_v23 = vpop.f32.mrf.mxu0  ;;  %v836_v24 = vpop.f32.mrf.mxu1 }
 0x113   : > { %v948_v28 = vadd.f32 %v836_v24, %v525_v23  ;;  %v1593_v21 = vpop.permute.xlu1 %1592  ;;  %v1598_v23 = vpop.permute.xlu2 %1597  ;;  %v963_v24 = vadd.f32 %v2640_v54, %v2565_v45 }
 0x114   : > { %v2649_v25 = vadd.f32 %v1725_v11, %v1690_v22  ;;  %v1771_v26 = vmul.f32 %v1690_v22, %v1690_v22  ;;  %v962_v11 = vadd.f32 %v2637_v40, %v2554_v30 }
 0x116   : > { %v2651_v31 = vadd.f32 %v1805_v17, %v1771_v26  ;;  %v1588_v17 = vpop.permute.xlu0 %1587 }
 0x117   : > { %v2653_v32 = vpop.f32.mrf.mxu3  ;;  %v1219_v33 = vpop.f32.mrf.mxu2 }
 0x118   : > { %v2655_v34 = vadd.f32 %v1219_v33, %v948_v28 }
 0x11a   : > { %1439 = vst [vmem:[%s2512_s26 + $0x80] sm:$0xff] %v2655_v34  ;;  %v528_v35 = vpop.f32.mrf.mxu0  ;;  %v839_v36 = vpop.f32.mrf.mxu1 }
 0x11b   : > { %v949_v37 = vadd.f32 %v839_v36, %v528_v35 }
 0x11e   : > { %v1603_v36 = vpop.permute.xlu0 %1602 }
 0x11f   : > { %v2659_v38 = vpop.f32.mrf.mxu3  ;;  %v1222_v39 = vpop.f32.mrf.mxu2 }
 0x120   : > { %v2661_v41 = vadd.f32 %v1222_v39, %v949_v37  ;;  %v1608_v39 = vpop.permute.xlu1 %1607 }
 0x122   : > { %1440 = vst [vmem:[%s2512_s26 + $0x88] sm:$0xff] %v2661_v41  ;;  %v531_v42 = vpop.f32.mrf.mxu0  ;;  %v842_v43 = vpop.f32.mrf.mxu1 }
 0x123   : > { %v950_v44 = vadd.f32 %v842_v43, %v531_v42  ;;  %v964_v42 = vadd.f32 %v2643_v4, %v2576_v62 }
 0x126   : > { %v1618_v4 = vpop.permute.xlu0 %1617 }
 0x127   : > { %v1225_v49 = vpop.f32.mrf.mxu2  ;;  %v1252_v50 = vpop.f32.mrf.mxu3 }
 0x128   : > { %v2667_v51 = vadd.f32 %v1225_v49, %v950_v44  ;;  %v2669_v52 = vadd.f32 %v1252_v50, %v959_v47  ;;  %v1613_v47 = vpop.permute.xlu2 %1612  ;;  %v1691_v49 = vmul.f32 %v1578_v6, %v2655_v34 }
 0x12a   : > { %1441 = vst [vmem:[%s2512_s26 + $0x90] sm:$0xff] %v2667_v51  ;;  %v534_v53 = vpop.f32.mrf.mxu0  ;;  %v845_v55 = vpop.f32.mrf.mxu1  ;;  %v1693_v62 = vmul.f32 %v1588_v17, %v2667_v51 }
 0x12b   : > { %1450 = vst [vmem:[%s2512_s26 + $0xd8] sm:$0xff] %v2669_v52  ;;  %v951_v56 = vadd.f32 %v845_v55, %v534_v53  ;;  %v1692_v55 = vmul.f32 %v1583_v9, %v2661_v41 }
 0x12c   : > { %v1774_v6 = vmul.f32 %v1693_v62, %v1693_v62 }
 0x12f   : > { %v1228_v58 = vpop.f32.mrf.mxu2  ;;  %v1255_v48 = vpop.f32.mrf.mxu3 }
 0x130   : > { %v1334_v63 = vadd.f32 %v1228_v58, %v951_v56  ;;  %v2677_v59 = vadd.f32 %v1255_v48, %v960_v57  ;;  %v1772_v57 = vmul.f32 %v1691_v49, %v1691_v49  ;;  %v965_v58 = vadd.f32 %v2646_v18, %v2587_v13  ;;  %v1628_v13 = vpop.permute.xlu2 %1627 }
 0x131   : > { %v1773_v48 = vmul.f32 %v1692_v55, %v1692_v55 }
 0x132   : > { %1442 = vst [vmem:[%s2512_s26 + $0x98] sm:$0xff] %v1334_v63  ;;  %v537_v60 = vpop.f32.mrf.mxu0  ;;  %v848_v0 = vpop.f32.mrf.mxu1 }
 0x133   : > { %1451 = vst [vmem:[%s2512_s26 + $0xe0] sm:$0xff] %v2677_v59  ;;  %v952_v1 = vadd.f32 %v848_v0, %v537_v60  ;;  %v1694_v60 = vmul.f32 %v1593_v21, %v1334_v63 }
 0x135   : > { %v1775_v63 = vmul.f32 %v1694_v60, %v1694_v60 }
 0x137   : > { %v1231_v3 = vpop.f32.mrf.mxu2  ;;  %v1258_v5 = vpop.f32.mrf.mxu3 }
 0x138   : > { %v1335_v61 = vadd.f32 %v1231_v3, %v952_v1  ;;  %v2684_v16 = vadd.f32 %v1258_v5, %v961_v2  ;;  %v1727_v1 = vadd.f32 %v2649_v25, %v1691_v49  ;;  %v1623_v3 = vpop.permute.xlu1 %1622  ;;  %v1807_v5 = vadd.f32 %v2651_v31, %v1772_v57 }
 0x139   : > { %v966_v31 = vadd.f32 %v2653_v32, %v2598_v29 }
 0x13a   : > { %1443 = vst [vmem:[%s2512_s26 + $0xa0] sm:$0xff] %v1335_v61  ;;  %v540_v7 = vpop.f32.mrf.mxu0  ;;  %v851_v8 = vpop.f32.mrf.mxu1  ;;  %v1728_v51 = vadd.f32 %v1727_v1, %v1692_v55  ;;  %v1808_v18 = vadd.f32 %v1807_v5, %v1773_v48 }
 0x13b   : > { %1452 = vst [vmem:[%s2512_s26 + $0xe8] sm:$0xff] %v2684_v16  ;;  %v953_v10 = vadd.f32 %v851_v8, %v540_v7  ;;  %v1695_v7 = vmul.f32 %v1598_v23, %v1335_v61 }
 0x13f   : > { %v1234_v12 = vpop.f32.mrf.mxu2  ;;  %v1261_v14 = vpop.f32.mrf.mxu3 }
 0x140   : > { %v1336_v27 = vadd.f32 %v1234_v12, %v953_v10  ;;  %v2691_v15 = vadd.f32 %v1261_v14, %v962_v11  ;;  %v1729_v11 = vadd.f32 %v1728_v51, %v1693_v62  ;;  %v1809_v12 = vadd.f32 %v1808_v18, %v1774_v6  ;;  %v1638_v29 = vpop.permute.xlu1 %1637 }
 0x141   : > { %v1776_v14 = vmul.f32 %v1695_v7, %v1695_v7 }
 0x142   : > { %1444 = vst [vmem:[%s2512_s26 + $0xa8] sm:$0xff] %v1336_v27  ;;  %v543_v19 = vpop.f32.mrf.mxu0  ;;  %v854_v20 = vpop.f32.mrf.mxu1  ;;  %v1696_v10 = vmul.f32 %v1603_v36, %v1336_v27  ;;  %v1730_v61 = vadd.f32 %v1729_v11, %v1694_v60 }
 0x143   : > { %1453 = vst [vmem:[%s2512_s26 + $0xf0] sm:$0xff] %v2691_v15  ;;  %v954_v22 = vadd.f32 %v854_v20, %v543_v19  ;;  %v1810_v19 = vadd.f32 %v1809_v12, %v1775_v63 }
 0x144   : > { %v1777_v20 = vmul.f32 %v1696_v10, %v1696_v10 }
 0x147   : > { %v1237_v30 = vpop.f32.mrf.mxu2  ;;  %v1264_v40 = vpop.f32.mrf.mxu3 }
 0x148   : > { %v1337_v26 = vadd.f32 %v1237_v30, %v954_v22  ;;  %v2698_v28 = vadd.f32 %v1264_v40, %v963_v24  ;;  %v1731_v24 = vadd.f32 %v1730_v61, %v1695_v7  ;;  %v1633_v40 = vpop.permute.xlu0 %1632  ;;  %v1653_v7 = vpop.permute.xlu1 %1652 }
 0x14a   : > { %1445 = vst [vmem:[%s2512_s26 + $0xb0] sm:$0xff] %v1337_v26  ;;  %v546_v33 = vpop.f32.mrf.mxu0  ;;  %v857_v35 = vpop.f32.mrf.mxu1  ;;  %v1697_v17 = vmul.f32 %v1608_v39, %v1337_v26  ;;  %v1732_v36 = vadd.f32 %v1731_v24, %v1696_v10  ;;  %v1706_v12 = vmul.f32 %v1653_v7, %v2698_v28 }
 0x14b   : > { %1454 = vst [vmem:[%s2512_s26 + $0xf8] sm:$0xff] %v2698_v28  ;;  %v955_v37 = vadd.f32 %v857_v35, %v546_v33  ;;  %v1811_v33 = vadd.f32 %v1810_v19, %v1776_v14 }
 0x14c   : > { %v1778_v35 = vmul.f32 %v1697_v17, %v1697_v17 }
 0x14d   : > { %v1812_v32 = vadd.f32 %v1811_v33, %v1777_v20 }
 0x14f   : > { %v1240_v43 = vpop.f32.mrf.mxu2  ;;  %v1267_v45 = vpop.f32.mrf.mxu3  ;;  %v1813_v49 = vadd.f32 %v1812_v32, %v1778_v35 }
 0x150   : > { %v1338_v54 = vadd.f32 %v1240_v43, %v955_v37  ;;  %v2705_v44 = vadd.f32 %v1267_v45, %v964_v42  ;;  %v1733_v43 = vadd.f32 %v1732_v36, %v1697_v17  ;;  %v1668_v24 = vpop.permute.xlu1 %1667 }
 0x152   : > { %1446 = vst [vmem:[%s2512_s26 + $0xb8] sm:$0xff] %v1338_v54  ;;  %v549_v50 = vpop.f32.mrf.mxu0  ;;  %v860_v53 = vpop.f32.mrf.mxu1  ;;  %v1698_v21 = vmul.f32 %v1613_v47, %v1338_v54 }
 0x153   : > { %1455 = vst [vmem:[%s2512_s26 + $0x100] sm:$0xff] %v2705_v44  ;;  %v956_v56 = vadd.f32 %v860_v53, %v549_v50  ;;  %v1643_v47 = vpop.permute.xlu2 %1642  ;;  %v967_v50 = vadd.f32 %v2659_v38, %v2609_v46  ;;  %v1703_v46 = vmul.f32 %v1638_v29, %v2677_v59 }
 0x154   : > { %v1779_v42 = vmul.f32 %v1698_v21, %v1698_v21  ;;  %v1734_v53 = vadd.f32 %v1733_v43, %v1698_v21 }
 0x155   : > { %v1784_v10 = vmul.f32 %v1703_v46, %v1703_v46 }
 0x157   : > { %v1243_v0 = vpop.f32.mrf.mxu2  ;;  %v1270_v34 = vpop.f32.mrf.mxu3 }
 0x158   : > { %v1339_v2 = vadd.f32 %v1243_v0, %v956_v56  ;;  %v2716_v41 = vadd.f32 %v1270_v34, %v965_v58  ;;  %v1814_v56 = vadd.f32 %v1813_v49, %v1779_v42  ;;  %v1702_v0 = vmul.f32 %v1633_v40, %v2669_v52 }
 0x15a   : > { %1447 = vst [vmem:[%s2512_s26 + $0xc0] sm:$0xff] %v1339_v2  ;;  %v552_v8 = vpop.f32.mrf.mxu0  ;;  %v863_v9 = vpop.f32.mrf.mxu1  ;;  %v1699_v26 = vmul.f32 %v1618_v4, %v1339_v2  ;;  %v1783_v51 = vmul.f32 %v1702_v0, %v1702_v0 }
 0x15b   : > { %1456 = vst [vmem:[%s2512_s26 + $0x108] sm:$0xff] %v2716_v41  ;;  %v957_v25 = vadd.f32 %v863_v9, %v552_v8  ;;  %v1704_v8 = vmul.f32 %v1643_v47, %v2684_v16  ;;  %v1658_v63 = vpop.permute.xlu2 %1657  ;;  %v1787_v16 = vmul.f32 %v1706_v12, %v1706_v12 }
 0x15c   : > { %v1780_v55 = vmul.f32 %v1699_v26, %v1699_v26  ;;  %v1735_v4 = vadd.f32 %v1734_v53, %v1699_v26 }
 0x15e   : > { %v1815_v34 = vadd.f32 %v1814_v56, %v1780_v55 }
 0x15f   : > { %v1246_v22 = vpop.f32.mrf.mxu2  ;;  %v1273_v23 = vpop.f32.mrf.mxu3 }
 0x160   : > { %v1340_v27 = vadd.f32 %v1246_v22, %v957_v25  ;;  %v2724_v30 = vadd.f32 %v1273_v23, %v966_v31  ;;  %v1707_v31 = vmul.f32 %v1658_v63, %v2705_v44 }
 0x162   : > { %1448 = vst [vmem:[%s2512_s26 + $0xc8] sm:$0xff] %v1340_v27  ;;  %v555_v37 = vpop.f32.mrf.mxu0  ;;  %v866_v39 = vpop.f32.mrf.mxu1  ;;  %v1700_v45 = vmul.f32 %v1623_v3, %v1340_v27  ;;  %v1709_v27 = vmul.f32 %v1668_v24, %v2724_v30 }
 0x163   : > { %1457 = vst [vmem:[%s2512_s26 + $0x110] sm:$0xff] %v2724_v30  ;;  %v958_v54 = vadd.f32 %v866_v39, %v555_v37  ;;  %v1648_v3 = vpop.permute.xlu0 %1647  ;;  %v1673_v28 = vpop.permute.xlu2 %1672 }
 0x164   : > { %v1781_v58 = vmul.f32 %v1700_v45, %v1700_v45  ;;  %v1736_v1 = vadd.f32 %v1735_v4, %v1700_v45  ;;  %v1705_v52 = vmul.f32 %v1648_v3, %v2691_v15  ;;  %v1788_v15 = vmul.f32 %v1707_v31, %v1707_v31 }
 0x165   : > { %v1790_v37 = vmul.f32 %v1709_v27, %v1709_v27 }
 0x166   : > { %v1816_v38 = vadd.f32 %v1815_v34, %v1781_v58  ;;  %v1786_v17 = vmul.f32 %v1705_v52, %v1705_v52 }
 0x167   : > { %v1249_v57 = vpop.f32.mrf.mxu2  ;;  %v1276_v62 = vpop.f32.mrf.mxu3 }
 0x168   : > { %v1341_v48 = vadd.f32 %v1249_v57, %v958_v54  ;;  %v1350_v60 = vadd.f32 %v1276_v62, %v967_v50 }
 0x16a   : > { %1449 = vst [vmem:[%s2512_s26 + $0xd0] sm:$0xff] %v1341_v48  ;;  %v1701_v2 = vmul.f32 %v1628_v13, %v1341_v48  ;;  %v1785_v13 = vmul.f32 %v1704_v8, %v1704_v8  ;;  %v1710_v36 = vmul.f32 %v1673_v28, %v1350_v60 }
 0x16b   : > { %1458 = vst [vmem:[%s2512_s26 + $0x118] sm:$0xff] %v1350_v60  ;;  %v1663_v20 = vpop.permute.xlu0 %1662 }
 0x16c   : > { %v1737_v5 = vadd.f32 %v1736_v1, %v1701_v2  ;;  %v1782_v6 = vmul.f32 %v1701_v2, %v1701_v2  ;;  %v1708_v21 = vmul.f32 %v1663_v20, %v2716_v41  ;;  %v1791_v42 = vmul.f32 %v1710_v36, %v1710_v36 }
 0x16e   : > { %v1738_v9 = vadd.f32 %v1737_v5, %v1702_v0  ;;  %v1817_v18 = vadd.f32 %v1816_v38, %v1782_v6  ;;  %v1789_v35 = vmul.f32 %v1708_v21, %v1708_v21 }
 0x170   : > { %v1739_v11 = vadd.f32 %v1738_v9, %v1703_v46  ;;  %v1818_v25 = vadd.f32 %v1817_v18, %v1783_v51 }
 0x172   : > { %v1740_v14 = vadd.f32 %v1739_v11, %v1704_v8  ;;  %v1819_v59 = vadd.f32 %v1818_v25, %v1784_v10 }
 0x174   : > { %v1741_v61 = vadd.f32 %v1740_v14, %v1705_v52  ;;  %v1820_v19 = vadd.f32 %v1819_v59, %v1785_v13 }
 0x176   : > { %v1821_v22 = vadd.f32 %v1820_v19, %v1786_v17  ;;  %v1742_v23 = vadd.f32 %v1741_v61, %v1706_v12 }
 0x178   : > { %v1743_v40 = vadd.f32 %v1742_v23, %v1707_v31  ;;  %v1822_v33 = vadd.f32 %v1821_v22, %v1787_v16 }
 0x17a   : > { %v1744_v26 = vadd.f32 %v1743_v40, %v1708_v21  ;;  %v1823_v44 = vadd.f32 %v1822_v33, %v1788_v15 }
 0x17c   : > { %v1745_v39 = vadd.f32 %v1744_v26, %v1709_v27  ;;  %v1824_v29 = vadd.f32 %v1823_v44, %v1789_v35 }
 0x17e   : > { %v1746_v32 = vadd.f32 %v1745_v39, %v1710_v36  ;;  %v1825_v41 = vadd.f32 %v1824_v29, %v1790_v37 }
 0x180   : > { %v1747_v43 = vrot.slane %v1746_v32, 4  ;;  %v1826_v45 = vadd.f32 %v1825_v41, %v1791_v42 }
 0x182   : > { %v1748_v54 = vadd.f32 %v1747_v43, %v1746_v32  ;;  %v1827_v47 = vrot.slane %v1826_v45, 4 }
 0x184   : > { %v1749_v49 = vrot.slane %v1748_v54, 2  ;;  %v1828_v30 = vadd.f32 %v1827_v47, %v1826_v45 }
 0x186   : > { %v1750_v50 = vadd.f32 %v1749_v49, %v1748_v54  ;;  %v1829_v53 = vrot.slane %v1828_v30, 2 }
 0x188   : > { %v1751_v55 = vrot.slane %v1750_v50, 1  ;;  %v1830_v56 = vadd.f32 %v1829_v53, %v1828_v30 }
 0x18a   : > { %v1752_v57 = vadd.f32 %v1751_v55, %v1750_v50  ;;  %v1831_v62 = vrot.slane %v1830_v56, 1 }
 0x18c   : > { %v1832_v4 = vadd.f32 %v1831_v62, %v1830_v56  ;;  %1754 = vst [vmem:[%s298_s10] sm:$0xff] %v1752_v57 }
 0x18e   : > { %1834 = vst [vmem:[%s302_s13] sm:$0xff] %v1832_v4 }
 0x18f PF: > { %s16_s20 = sadd.s32 1, %s2188_s20   ;;  %s2763_s18 = smov %s2184_s19 }
 0x190   : > { %p13_p5 = scmp.ge.s32.totalorder %s16_s20, 4   ;;  %s2764_s19 = smov %s2766_s21 }
 0x192   :  { %15 = sbr.rel (!%p13_p5) target bundleno = 2 (0x2), region = 95 }

</bundles_post_ra>
